<compile_context>
chip_gen: v7x
topology: tpu7x:2x2x1
jax: 0.10.0
libtpu: 0.0.40
codegen_flags: <defaults>
</compile_context>

<pallas_src>
import jax
import jax.numpy as jnp
from jax import lax
from jax.experimental import pallas as pl
from jax.experimental.pallas import tpu as pltpu


def _patch_embed_kernel(p_ref, w_ref, b_ref, o_ref):
    # p_ref: (tM, K)  bf16 flattened patch rows (row order c, kh, kw)
    # w_ref: (E, K)   bf16 Conv2d weight, OIHW flattened -- NOT transposed
    # b_ref: (1, E)   f32 bias
    # o_ref: (tM, E)  f32 projected rows
    acc = lax.dot_general(
        p_ref[...], w_ref[...],
        dimension_numbers=(((1,), (1,)), ((), ())),  # contract K with K: A @ B^T
        preferred_element_type=jnp.float32,
    )
    o_ref[...] = (acc + b_ref[...]).astype(o_ref.dtype)


def _pick_tile_m(M: int) -> int:
    # Target ~256-512 row tiles (good MXU utilization, VMEM stays bounded even
    # on v7x's 64 MiB) while keeping >=2 grid steps when possible so the
    # pipeline has work to overlap and v7x can shard across both TensorCores.
    for t in (512, 256, 128, 64, 32, 16, 8):
        if t * 2 <= M and M % t == 0:
            return t
    return M


def conv2d_patch_projection_tokens(x, weight, bias, patch_size):
    """nn.Conv2d(C, E, kernel_size=ps, stride=ps) on NCHW x, returned as
    flattened tokens of shape (B*Hp*Wp, E) in (b, hp, wp) row order."""
    B, C, H, W = x.shape
    E = weight.shape[0]
    ps = patch_size
    Hp, Wp = H // ps, W // ps
    K = C * ps * ps
    M = B * Hp * Wp

    # --- glue: extract non-overlapping patches, row order (c, kh, kw) -------
    # TODO(synk): for large images fold this into the kernel with BlockSpec
    # index_maps over (B, Hp, Wp) instead of materializing `patches` in HBM.
    patches = x.reshape(B, C, Hp, ps, Wp, ps)
    patches = patches.transpose(0, 2, 4, 1, 3, 5)            # (B, Hp, Wp, C, ps, ps)
    patches = patches.reshape(M, K).astype(jnp.bfloat16)     # bf16 into the MXU

    # Weight kept as (E, K): pure reshape of OIHW, no materialized transpose.
    # (In a real model, cast/store the bf16 weight once at parameter init.)
    w2d = weight.reshape(E, K).astype(jnp.bfloat16)
    b2d = bias.reshape(1, E).astype(jnp.float32)             # bias add stays f32

    tm = _pick_tile_m(M)
    grid = (M // tm,)

    cost = pl.CostEstimate(
        flops=2 * M * K * E,
        bytes_accessed=M * K * 2 + E * K * 2 + E * 4 + M * E * 4,
        transcendentals=0,
    )

    out = pl.pallas_call(
        _patch_embed_kernel,
        out_shape=jax.ShapeDtypeStruct((M, E), jnp.float32),
        grid=grid,
        in_specs=[
            pl.BlockSpec((tm, K), lambda i: (i, 0)),  # patch rows: tiled over M
            pl.BlockSpec((E, K), lambda i: (0, 0)),   # weight: resident across grid
            pl.BlockSpec((1, E), lambda i: (0, 0)),   # bias: resident
        ],
        out_specs=pl.BlockSpec((tm, E), lambda i: (i, 0)),  # lane-dense (full E)
        compiler_params=pltpu.CompilerParams(
            dimension_semantics=("parallel",),
            vmem_limit_bytes=32 * 1024 * 1024,
        ),
        cost_estimate=cost,
    )(patches, w2d, b2d)
    return out                                               # (M, E) f32


def patch_embedding_forward(x, weight, bias, patch_size):
    """Forward pass of PatchEmbedding (Conv2d projection + fixed rearrange)."""
    B, C, H, W = x.shape
    E = weight.shape[0]
    Hp, Wp = H // patch_size, W // patch_size

    tokens = conv2d_patch_projection_tokens(x, weight, bias, patch_size)  # (B*Hp*Wp, E)

    # rearrange(x, 'b (h w) (p1 p2 c) -> b c (h p1) (w p2)', h=4, w=4, p1=12, p2=12, c=20)
    # TODO(synk): the original einops pattern expects a rank-3 tensor but the
    # Conv2d output is rank-4 (would raise in PyTorch); as before we interpret
    # it on the standard ViT token layout (B, h*w, embed_dim), which is exactly
    # the kernel's (M, E) row order, so only one transpose pass remains.
    h, w, p1, p2, c = 4, 4, 12, 12, 20
    assert Hp == h and Wp == w and E == p1 * p2 * c
    y = tokens.reshape(B, h, w, p1, p2, c)
    y = y.transpose(0, 5, 1, 3, 2, 4)                        # b c h p1 w p2
    y = y.reshape(B, c, h * p1, w * p2)                      # (B, 20, 48, 48)
    return y


if __name__ == "__main__":
    # Module config implied by the hard-coded rearrange:
    #   embed_dim = p1*p2*c = 12*12*20 = 2880,  num_patches = h*w = 16
    # so the image spatial size must be 4 * patch_size.
    in_channels = 3
    patch_size = 8
    embed_dim = 2880
    B, H, W = 2, 4 * patch_size, 4 * patch_size

    key = jax.random.PRNGKey(0)
    kx, kw, kb = jax.random.split(key, 3)

    x = jax.random.normal(kx, (B, in_channels, H, W), dtype=jnp.float32)
    weight = (
        jax.random.normal(kw, (embed_dim, in_channels, patch_size, patch_size),
                          dtype=jnp.float32)
        * 0.02
    )
    bias = jax.random.normal(kb, (embed_dim,), dtype=jnp.float32) * 0.02

    fwd = jax.jit(patch_embedding_forward, static_argnames=("patch_size",))
    out = fwd(x, weight, bias, patch_size=patch_size)
    out = jax.block_until_ready(out)

    assert out.shape == (B, 20, 48, 48), out.shape
    assert out.dtype == jnp.float32

    # Reference: true-f32 Conv2d + identical rearrange. bf16 kernel inputs lose
    # mantissa (accumulation stays f32), so tolerance is loosened accordingly.
    conv_ref = lax.conv_general_dilated(
        x, weight, window_strides=(patch_size, patch_size), padding="VALID",
        dimension_numbers=("NCHW", "OIHW", "NCHW"),
        precision=lax.Precision.HIGHEST,
    ) + bias.reshape(1, embed_dim, 1, 1)
    tokens_ref = conv_ref.reshape(B, embed_dim, 16).transpose(0, 2, 1)
    ref = (tokens_ref.reshape(B, 4, 4, 12, 12, 20)
           .transpose(0, 5, 1, 3, 2, 4)
           .reshape(B, 20, 48, 48))
    max_err = float(jnp.max(jnp.abs(out - ref)))
    assert jnp.allclose(out, ref, atol=2e-2, rtol=2e-2), max_err

    print("KERNEL_OK")
</pallas_src>

<mosaic_0001>
module attributes {stable_mosaic.version = 11 : i64} {
  func.func @_patch_embed_kernel(%arg0: i32, %arg1: memref<16x192xbf16, #tpu.memory_space<vmem>>, %arg2: memref<2880x192xbf16, #tpu.memory_space<vmem>>, %arg3: memref<1x2880xf32, #tpu.memory_space<vmem>>, %arg4: memref<16x2880xf32, #tpu.memory_space<vmem>>) attributes {dimension_semantics = [#tpu.dimension_semantics<parallel>], iteration_bounds = array<i64: 2>, scalar_prefetch = 0 : i64, scratch_operands = 0 : i64, tpu.core_type = #tpu.core_type<tc>, window_params = [{transform_indices = @transform_0, window_bounds = array<i64: 16, 192>}, {pipeline_mode = #tpu.pipeline_mode<synchronous>, transform_indices = @transform_1, window_bounds = array<i64: 2880, 192>}, {pipeline_mode = #tpu.pipeline_mode<synchronous>, transform_indices = @transform_2, window_bounds = array<i64: 1, 2880>}, {transform_indices = @transform_3, window_bounds = array<i64: 16, 2880>}]} {
    %c0 = arith.constant 0 : index
    %c0_0 = arith.constant 0 : index
    %0 = vector.load %arg1[%c0, %c0_0] : memref<16x192xbf16, #tpu.memory_space<vmem>>, vector<16x192xbf16>
    %c0_1 = arith.constant 0 : index
    %c0_2 = arith.constant 0 : index
    %1 = vector.load %arg2[%c0_1, %c0_2] : memref<2880x192xbf16, #tpu.memory_space<vmem>>, vector<2880x192xbf16>
    %cst = arith.constant dense<0.000000e+00> : vector<16x2880xf32>
    %2 = tpu.matmul %0, %1, %cst {dimension_numbers = #tpu.dot_dimension_numbers<[1], [1], [0], [0], [0, 0, 1, 0], [], []>} : vector<16x192xbf16>, vector<2880x192xbf16>, vector<16x2880xf32> -> vector<16x2880xf32>
    %c0_3 = arith.constant 0 : index
    %c0_4 = arith.constant 0 : index
    %3 = vector.load %arg3[%c0_3, %c0_4] : memref<1x2880xf32, #tpu.memory_space<vmem>>, vector<1x2880xf32>
    %4 = vector.broadcast %3 : vector<1x2880xf32> to vector<16x2880xf32>
    %5 = arith.addf %2, %4 : vector<16x2880xf32>
    %c0_5 = arith.constant 0 : index
    %c0_6 = arith.constant 0 : index
    %6 = vector.load %arg4[%c0_5, %c0_6] : memref<16x2880xf32, #tpu.memory_space<vmem>>, vector<16x2880xf32>
    tpu.vector_store %arg4[%c0_5, %c0_6], %5 {strides = array<i32>} : memref<16x2880xf32, #tpu.memory_space<vmem>>, vector<16x2880xf32>,
    return
  }
  func.func @transform_0(%arg0: i32) -> (i32, i32) {
    %c0_i32 = arith.constant 0 : i32
    %c0_i32_0 = arith.constant 0 : i32
    return %arg0, %c0_i32 : i32, i32
  }
  func.func @transform_1(%arg0: i32) -> (i32, i32) {
    %c0_i32 = arith.constant 0 : i32
    %c0_i32_0 = arith.constant 0 : i32
    %c0_i32_1 = arith.constant 0 : i32
    return %c0_i32, %c0_i32_0 : i32, i32
  }
  func.func @transform_2(%arg0: i32) -> (i32, i32) {
    %c0_i32 = arith.constant 0 : i32
    %c0_i32_0 = arith.constant 0 : i32
    %c0_i32_1 = arith.constant 0 : i32
    return %c0_i32, %c0_i32_0 : i32, i32
  }
  func.func @transform_3(%arg0: i32) -> (i32, i32) {
    %c0_i32 = arith.constant 0 : i32
    %c0_i32_0 = arith.constant 0 : i32
    return %arg0, %c0_i32 : i32, i32
  }
}

</mosaic_0001>

<bundles_post_ra>
// kernel: patch_embedding_forward.1
= control target key start
LH: loop header
LB: loop body
LE: loop exit
PB: predicated region body
PF: predicated region fallthrough
CT: control target
= control target key end

     0   :  { %s4604_s12 = smov 0   ;;  %s6063_s0 = inlined_call_operand.vmem [shape: bf16[32,192], index: 0, kind: input, shape index: {}]   ;;  %s6064_s1 = inlined_call_operand.vmem [shape: bf16[2880,192], index: 1, kind: input, shape index: {}]   ;;  %s6065_s2 = inlined_call_operand.vmem [shape: f32[1,2880], index: 2, kind: input, shape index: {}]   ;;  %s6066_s3 = inlined_call_operand.vmem [shape: f32[32,2880], index: 3, kind: output, shape index: {}]  }
   0x1 LB: > { %s3454_s13 = sadd.s32 4294967295, %s4582_s12   ;;  %p3458_p0 = scmp.ge.s32.totalorder %s4582_s12, 1  ;;  %s4582_s12 = sphi %s4604_s12, %s13_s12  }
   0x2   : > { %p139_p1 = scmp.lt.s32.totalorder %s4582_s12, 3 }
   0x4   : > { %p140_p2 = pnand %p3458_p0, %p139_p1 }
   0x5   : > { %v4030_v0 = vld [vmem:[%s6064_s1 + $0x4] ss:$8 sps:$4 sm:$0xff] (!%p140_p2)   ;;  %vm2292_vm0 = vcmask (!%p140_p2), 523264   ;;  %v4032_v1 = vld [vmem:[%s6064_s1] ss:$8 sps:$4 sm:$0xff] (!%p140_p2)   ;;  %s3459_s24 = sshll.u32 (!%p140_p2), %s3454_s13, 1 }
   0x6   : > { %143 = sbr.rel (%p140_p2) target bundleno = 992 (0x3e0), region = 32  ;;  %3826 = vmatprep.subr.msk.bf16.mxu0 (!%p140_p2), %vm2292_vm0, %v4030_v0  ;;  %v4033_v2 = vld [vmem:[%s6064_s1 + $0x14] ss:$8 sps:$4 sm:$0xff] (!%p140_p2)   ;;  %v4035_v3 = vld [vmem:[%s6064_s1 + $0x10] ss:$8 sps:$4 sm:$0xff] (!%p140_p2)   ;;  %p166_p3 = scmp.lt.s32.totalorder (!%p140_p2), %s3459_s24, 3 }
   0x7   : > { %2837 = vmatpush1.bf16.xpose.msra.mxu0 (!%p140_p2), %v4032_v1  ;;  %v4036_v4 = vld [vmem:[%s6064_s1 + $0x24] ss:$8 sps:$4 sm:$0xff] (!%p140_p2)   ;;  %v4038_v5 = vld [vmem:[%s6064_s1 + $0x20] ss:$8 sps:$4 sm:$0xff] (!%p140_p2)   ;;  %v4039_v6 = vld [vmem:[%s6064_s1 + $0x34] ss:$8 sps:$4 sm:$0xff] (!%p140_p2)  }
   0x8   : > { %3827 = vmatprep.subr.msk.bf16.mxu0 (!%p140_p2), %vm2292_vm0, %v4033_v2  ;;  %v4066_v7 = vld [vmem:[%s6064_s1 + $0x104] ss:$8 sps:$4 sm:$0xff] (!%p140_p2)   ;;  %v4068_v8 = vld [vmem:[%s6064_s1 + $0x100] ss:$8 sps:$4 sm:$0xff] (!%p140_p2)   ;;  %v4072_v9 = vld [vmem:[%s6064_s1 + $0x114] ss:$8 sps:$4 sm:$0xff] (!%p140_p2)  }
   0x9   : > { %3843 = vmatprep.subr.msk.bf16.mxu1 (!%p140_p2), %vm2292_vm0, %v4066_v7  ;;  %v4041_v10 = vld [vmem:[%s6064_s1 + $0x30] ss:$8 sps:$4 sm:$0xff] (!%p140_p2)   ;;  %v4042_v11 = vld [vmem:[%s6064_s1 + $0x44] ss:$8 sps:$4 sm:$0xff] (!%p140_p2)   ;;  %v4044_v15 = vld [vmem:[%s6064_s1 + $0x40] ss:$8 sps:$4 sm:$0xff] (!%p140_p2)  }
   0xa   : > { %2880 = vmatpush1.bf16.xpose.msra.mxu1 (!%p140_p2), %v4068_v8  ;;  %v4074_v12 = vld [vmem:[%s6064_s1 + $0x110] ss:$8 sps:$4 sm:$0xff] (!%p140_p2)   ;;  %v4078_v13 = vld [vmem:[%s6064_s1 + $0x124] ss:$8 sps:$4 sm:$0xff] (!%p140_p2)   ;;  %v4045_v16 = vld [vmem:[%s6064_s1 + $0x54] ss:$8 sps:$4 sm:$0xff] (!%p140_p2)  }
   0xb   : > { %3844 = vmatprep.subr.msk.bf16.mxu1 (!%p140_p2), %vm2292_vm0, %v4072_v9  ;;  %v4080_v17 = vld [vmem:[%s6064_s1 + $0x120] ss:$8 sps:$4 sm:$0xff] (!%p140_p2)   ;;  %v4084_v18 = vld [vmem:[%s6064_s1 + $0x134] ss:$8 sps:$4 sm:$0xff] (!%p140_p2)   ;;  %v4047_v19 = vld [vmem:[%s6064_s1 + $0x50] ss:$8 sps:$4 sm:$0xff] (!%p140_p2)  }
   0xc   : > { %v4048_v20 = vld [vmem:[%s6064_s1 + $0x64] ss:$8 sps:$4 sm:$0xff] (!%p140_p2)   ;;  %v4086_v21 = vld [vmem:[%s6064_s1 + $0x130] ss:$8 sps:$4 sm:$0xff] (!%p140_p2)   ;;  %v4050_v23 = vld [vmem:[%s6064_s1 + $0x60] ss:$8 sps:$4 sm:$0xff] (!%p140_p2)  }
   0xd   : > { %s6068_s24 = smov (!%p166_p3, %s3459_s24), 3  ;;  %v4090_v22 = vld [vmem:[%s6064_s1 + $0x144] ss:$8 sps:$4 sm:$0xff]   ;;  %v4051_v24 = vld [vmem:[%s6064_s1 + $0x74] ss:$8 sps:$4 sm:$0xff]  }
   0xe   : > { %s4020_s10 = sshll.u32 %s6068_s24, 3  ;;  %v4094_v25 = vld [vmem:[%s6064_s1 + $0x140] ss:$8 sps:$4 sm:$0xff]   ;;  %v4099_v26 = vld [vmem:[%s6064_s1 + $0x154] ss:$8 sps:$4 sm:$0xff]   ;;  %s4021_s23 = smul.u32 184, %s6068_s24 }
   0xf   : > { %2839 = vmatpush1.bf16.xpose.msra.mxu0 %v4035_v3  ;;  %s4666_s20 = scalar_lea.vmem %s6063_s0, %s4020_s10  ;;  %v4053_v27 = vld [vmem:[%s6064_s1 + $0x70] ss:$8 sps:$4 sm:$0xff]   ;;  %v4054_v29 = vld [vmem:[%s6064_s1 + $0x84] ss:$8 sps:$4 sm:$0xff]   ;;  %v4056_v31 = vld [vmem:[%s6064_s1 + $0x80] ss:$8 sps:$4 sm:$0xff]  }
  0x10   : > { %3828 = vmatprep.subr.msk.bf16.mxu0 %vm2292_vm0, %v4036_v4  ;;  %v4671_v14 = vld [vmem:[%s4666_s20 + $0x4] ss:$8 sps:$4 sm:$0xff]   ;;  %v4101_v28 = vld [vmem:[%s6064_s1 + $0x150] ss:$8 sps:$4 sm:$0xff]   ;;  %v4107_v32 = vld [vmem:[%s6064_s1 + $0x160] ss:$8 sps:$4 sm:$0xff]   ;;  %s5262_s27 = scalar_lea.vmem %s6066_s3, %s4021_s23 }
  0x11   : > { %3842 = vmatprep.mubr.msk.bf16.mxu0 %vm2292_vm0, %v4671_v14  ;;  %3859 = vmatprep.mubr.msk.bf16.mxu1 %vm2292_vm0, %v4671_v14  ;;  %v4105_v30 = vld [vmem:[%s6064_s1 + $0x164] ss:$8 sps:$4 sm:$0xff]   ;;  %v4057_v33 = vld [vmem:[%s6064_s1 + $0x94] ss:$8 sps:$4 sm:$0xff]   ;;  %v4059_v35 = vld [vmem:[%s6064_s1 + $0x90] ss:$8 sps:$4 sm:$0xff]  }
  0x12   : > { %2882 = vmatpush1.bf16.xpose.msra.mxu1 %v4074_v12  ;;  %v4111_v34 = vld [vmem:[%s6064_s1 + $0x174] ss:$8 sps:$4 sm:$0xff]   ;;  %v4113_v36 = vld [vmem:[%s6064_s1 + $0x170] ss:$8 sps:$4 sm:$0xff]   ;;  %v4060_v37 = vld [vmem:[%s6064_s1 + $0xa4] ss:$8 sps:$4 sm:$0xff]  }
  0x13   : > { %3845 = vmatprep.subr.msk.bf16.mxu1 %vm2292_vm0, %v4078_v13  ;;  %v4117_v38 = vld [vmem:[%s6064_s1 + $0x184] ss:$8 sps:$4 sm:$0xff]   ;;  %v4062_v39 = vld [vmem:[%s6064_s1 + $0xa0] ss:$8 sps:$4 sm:$0xff]   ;;  %v4063_v41 = vld [vmem:[%s6064_s1 + $0xb4] ss:$8 sps:$4 sm:$0xff]  }
  0x14   : > { %v4119_v40 = vld [vmem:[%s6064_s1 + $0x180] ss:$8 sps:$4 sm:$0xff]   ;;  %v4123_v42 = vld [vmem:[%s6064_s1 + $0x194] ss:$8 sps:$4 sm:$0xff]   ;;  %v4065_v43 = vld [vmem:[%s6064_s1 + $0xb0] ss:$8 sps:$4 sm:$0xff]  }
  0x15   : > { %v4125_v44 = vld [vmem:[%s6064_s1 + $0x190] ss:$8 sps:$4 sm:$0xff]   ;;  %v4069_v45 = vld [vmem:[%s6064_s1 + $0xc4] ss:$8 sps:$4 sm:$0xff]   ;;  %v4071_v47 = vld [vmem:[%s6064_s1 + $0xc0] ss:$8 sps:$4 sm:$0xff]  }
  0x16   : > { %v4129_v46 = vld [vmem:[%s6064_s1 + $0x1a4] ss:$8 sps:$4 sm:$0xff]   ;;  %v4131_v48 = vld [vmem:[%s6064_s1 + $0x1a0] ss:$8 sps:$4 sm:$0xff]   ;;  %v4075_v49 = vld [vmem:[%s6064_s1 + $0xd4] ss:$8 sps:$4 sm:$0xff]  }
  0x17   : > { %2841 = vmatpush1.bf16.xpose.msra.mxu0 %v4038_v5  ;;  %v4135_v50 = vld [vmem:[%s6064_s1 + $0x1b4] ss:$8 sps:$4 sm:$0xff]   ;;  %v4077_v51 = vld [vmem:[%s6064_s1 + $0xd0] ss:$8 sps:$4 sm:$0xff]   ;;  %v4081_v53 = vld [vmem:[%s6064_s1 + $0xe4] ss:$8 sps:$4 sm:$0xff]  }
  0x18   : > { %3829 = vmatprep.subr.msk.bf16.mxu0 %vm2292_vm0, %v4039_v6  ;;  %v4137_v52 = vld [vmem:[%s6064_s1 + $0x1b0] ss:$8 sps:$4 sm:$0xff]   ;;  %v4141_v54 = vld [vmem:[%s6064_s1 + $0x1c4] ss:$8 sps:$4 sm:$0xff]   ;;  %v4083_v55 = vld [vmem:[%s6064_s1 + $0xe0] ss:$8 sps:$4 sm:$0xff]  }
  0x19   : > { %v4143_v56 = vld [vmem:[%s6064_s1 + $0x1c0] ss:$8 sps:$4 sm:$0xff]   ;;  %v4087_v57 = vld [vmem:[%s6064_s1 + $0xf4] ss:$8 sps:$4 sm:$0xff]   ;;  %v4089_v59 = vld [vmem:[%s6064_s1 + $0xf0] ss:$8 sps:$4 sm:$0xff]  }
  0x1a   : > { %2884 = vmatpush1.bf16.xpose.msra.mxu1 %v4080_v17  ;;  %v4147_v58 = vld [vmem:[%s6064_s1 + $0x1d4] ss:$8 sps:$4 sm:$0xff]   ;;  %v4149_v60 = vld [vmem:[%s6064_s1 + $0x1d0] ss:$8 sps:$4 sm:$0xff]   ;;  %v4096_v61 = vld [vmem:[%s6064_s1 + $0x204] ss:$8 sps:$4 sm:$0xff]  }
  0x1b   : > { %3846 = vmatprep.subr.msk.bf16.mxu1 %vm2292_vm0, %v4084_v18  ;;  %v4153_v62 = vld [vmem:[%s6064_s1 + $0x1e4] ss:$8 sps:$4 sm:$0xff]   ;;  %v4844_v63 = vld [vmem:[%s4666_s20] ss:$8 sps:$4 sm:$0xff]   ;;  %v4102_v2 = vld [vmem:[%s6064_s1 + $0x214] ss:$8 sps:$4 sm:$0xff]  }
  0x1c   : > { %v4098_v0 = vld [vmem:[%s6064_s1 + $0x200] ss:$8 sps:$4 sm:$0xff]   ;;  %v4159_v3 = vld [vmem:[%s6064_s1 + $0x1f4] ss:$8 sps:$4 sm:$0xff]   ;;  %v4104_v4 = vld [vmem:[%s6064_s1 + $0x210] ss:$8 sps:$4 sm:$0xff]  }
  0x1d   : > { %v4155_v1 = vld [vmem:[%s6064_s1 + $0x1e0] ss:$8 sps:$4 sm:$0xff]   ;;  %v4161_v5 = vld [vmem:[%s6064_s1 + $0x1f0] ss:$8 sps:$4 sm:$0xff]   ;;  %v4108_v6 = vld [vmem:[%s6064_s1 + $0x224] ss:$8 sps:$4 sm:$0xff]  }
  0x1e   : > { %v4165_v7 = vld [vmem:[%s6064_s1 + $0x304] ss:$8 sps:$4 sm:$0xff]   ;;  %v4110_v8 = vld [vmem:[%s6064_s1 + $0x220] ss:$8 sps:$4 sm:$0xff]   ;;  %v4116_v12 = vld [vmem:[%s6064_s1 + $0x230] ss:$8 sps:$4 sm:$0xff]  }
  0x1f   : > { %2843 = vmatpush1.bf16.xpose.msra.mxu0 %v4041_v10  ;;  %v4167_v9 = vld [vmem:[%s6064_s1 + $0x300] ss:$8 sps:$4 sm:$0xff]   ;;  %v4114_v10 = vld [vmem:[%s6064_s1 + $0x234] ss:$8 sps:$4 sm:$0xff]   ;;  %v4173_v13 = vld [vmem:[%s6064_s1 + $0x310] ss:$8 sps:$4 sm:$0xff]  }
  0x20   : > { %3830 = vmatprep.subr.msk.bf16.mxu0 %vm2292_vm0, %v4042_v11  ;;  %v4171_v11 = vld [vmem:[%s6064_s1 + $0x314] ss:$8 sps:$4 sm:$0xff]   ;;  %v4122_v17 = vld [vmem:[%s6064_s1 + $0x240] ss:$8 sps:$4 sm:$0xff]  }
  0x21   : > { %v4126_v18 = vld [vmem:[%s6064_s1 + $0x254] ss:$8 sps:$4 sm:$0xff]  }
  0x22   : > { %2886 = vmatpush1.bf16.xpose.msra.mxu1 %v4086_v21  ;;  %v4185_v21 = vld [vmem:[%s6064_s1 + $0x330] ss:$8 sps:$4 sm:$0xff]  }
  0x23   : > { %3847 = vmatprep.subr.msk.bf16.mxu1 %vm2292_vm0, %v4090_v22  ;;  %v4132_v22 = vld [vmem:[%s6064_s1 + $0x264] ss:$8 sps:$4 sm:$0xff]  }
  0x27   : > { %2845 = vmatpush1.bf16.xpose.msra.mxu0 %v4044_v15  ;;  %v4120_v15 = vld [vmem:[%s6064_s1 + $0x244] ss:$8 sps:$4 sm:$0xff]  }
  0x28   : > { %3831 = vmatprep.subr.msk.bf16.mxu0 %vm2292_vm0, %v4045_v16  ;;  %v4177_v16 = vld [vmem:[%s6064_s1 + $0x324] ss:$8 sps:$4 sm:$0xff]  }
  0x2a   : > { %2888 = vmatpush1.bf16.xpose.msra.mxu1 %v4094_v25  ;;  %v4191_v25 = vld [vmem:[%s6064_s1 + $0x340] ss:$8 sps:$4 sm:$0xff]  }
  0x2b   : > { %3848 = vmatprep.subr.msk.bf16.mxu1 %vm2292_vm0, %v4099_v26  ;;  %v4138_v26 = vld [vmem:[%s6064_s1 + $0x274] ss:$8 sps:$4 sm:$0xff]  }
  0x2f   : > { %2847 = vmatpush1.bf16.xpose.msra.mxu0 %v4047_v19  ;;  %v4183_v19 = vld [vmem:[%s6064_s1 + $0x334] ss:$8 sps:$4 sm:$0xff]  }
  0x30   : > { %3832 = vmatprep.subr.msk.bf16.mxu0 %vm2292_vm0, %v4048_v20  ;;  %v4128_v20 = vld [vmem:[%s6064_s1 + $0x250] ss:$8 sps:$4 sm:$0xff]  }
  0x32   : > { %2890 = vmatpush1.bf16.xpose.msra.mxu1 %v4101_v28  ;;  %v4140_v28 = vld [vmem:[%s6064_s1 + $0x270] ss:$8 sps:$4 sm:$0xff]  }
  0x33   : > { %3849 = vmatprep.subr.msk.bf16.mxu1 %vm2292_vm0, %v4105_v30  ;;  %v4144_v30 = vld [vmem:[%s6064_s1 + $0x284] ss:$8 sps:$4 sm:$0xff]  }
  0x37   : > { %2849 = vmatpush1.bf16.xpose.msra.mxu0 %v4050_v23  ;;  %v4189_v23 = vld [vmem:[%s6064_s1 + $0x344] ss:$8 sps:$4 sm:$0xff]  }
  0x38   : > { %3833 = vmatprep.subr.msk.bf16.mxu0 %vm2292_vm0, %v4051_v24  ;;  %v4134_v24 = vld [vmem:[%s6064_s1 + $0x260] ss:$8 sps:$4 sm:$0xff]  }
  0x3a   : > { %2892 = vmatpush1.bf16.xpose.msra.mxu1 %v4107_v32  ;;  %v4146_v32 = vld [vmem:[%s6064_s1 + $0x280] ss:$8 sps:$4 sm:$0xff]  }
  0x3b   : > { %3850 = vmatprep.subr.msk.bf16.mxu1 %vm2292_vm0, %v4111_v34  ;;  %v4150_v34 = vld [vmem:[%s6064_s1 + $0x294] ss:$8 sps:$4 sm:$0xff]  }
  0x3f   : > { %2851 = vmatpush1.bf16.xpose.msra.mxu0 %v4053_v27  ;;  %v4195_v27 = vld [vmem:[%s6064_s1 + $0x354] ss:$8 sps:$4 sm:$0xff]  }
  0x40   : > { %3834 = vmatprep.subr.msk.bf16.mxu0 %vm2292_vm0, %v4054_v29  ;;  %v4197_v29 = vld [vmem:[%s6064_s1 + $0x350] ss:$8 sps:$4 sm:$0xff]  }
  0x42   : > { %2894 = vmatpush1.bf16.xpose.msra.mxu1 %v4113_v36  ;;  %v4152_v36 = vld [vmem:[%s6064_s1 + $0x290] ss:$8 sps:$4 sm:$0xff]  }
  0x43   : > { %3851 = vmatprep.subr.msk.bf16.mxu1 %vm2292_vm0, %v4117_v38  ;;  %v4156_v38 = vld [vmem:[%s6064_s1 + $0x2a4] ss:$8 sps:$4 sm:$0xff]  }
  0x47   : > { %2853 = vmatpush1.bf16.xpose.msra.mxu0 %v4056_v31  ;;  %v4201_v31 = vld [vmem:[%s6064_s1 + $0x364] ss:$8 sps:$4 sm:$0xff]  }
  0x48   : > { %3835 = vmatprep.subr.msk.bf16.mxu0 %vm2292_vm0, %v4057_v33  ;;  %v4203_v33 = vld [vmem:[%s6064_s1 + $0x360] ss:$8 sps:$4 sm:$0xff]  }
  0x4a   : > { %2896 = vmatpush1.bf16.xpose.msra.mxu1 %v4119_v40  ;;  %v4158_v40 = vld [vmem:[%s6064_s1 + $0x2a0] ss:$8 sps:$4 sm:$0xff]  }
  0x4b   : > { %3852 = vmatprep.subr.msk.bf16.mxu1 %vm2292_vm0, %v4123_v42  ;;  %v4162_v42 = vld [vmem:[%s6064_s1 + $0x2b4] ss:$8 sps:$4 sm:$0xff]  }
  0x4f   : > { %2855 = vmatpush1.bf16.xpose.msra.mxu0 %v4059_v35  ;;  %v4207_v35 = vld [vmem:[%s6064_s1 + $0x374] ss:$8 sps:$4 sm:$0xff]  }
  0x50   : > { %3836 = vmatprep.subr.msk.bf16.mxu0 %vm2292_vm0, %v4060_v37  ;;  %v4209_v37 = vld [vmem:[%s6064_s1 + $0x370] ss:$8 sps:$4 sm:$0xff]  }
  0x52   : > { %2898 = vmatpush1.bf16.xpose.msra.mxu1 %v4125_v44  ;;  %v4164_v44 = vld [vmem:[%s6064_s1 + $0x2b0] ss:$8 sps:$4 sm:$0xff]  }
  0x53   : > { %3853 = vmatprep.subr.msk.bf16.mxu1 %vm2292_vm0, %v4129_v46  ;;  %v4168_v46 = vld [vmem:[%s6064_s1 + $0x2c4] ss:$8 sps:$4 sm:$0xff]  }
  0x57   : > { %2857 = vmatpush1.bf16.xpose.msra.mxu0 %v4062_v39  ;;  %v4213_v39 = vld [vmem:[%s6064_s1 + $0x384] ss:$8 sps:$4 sm:$0xff]  }
  0x58   : > { %3837 = vmatprep.subr.msk.bf16.mxu0 %vm2292_vm0, %v4063_v41  ;;  %v4215_v41 = vld [vmem:[%s6064_s1 + $0x380] ss:$8 sps:$4 sm:$0xff]  }
  0x5a   : > { %2900 = vmatpush1.bf16.xpose.msra.mxu1 %v4131_v48  ;;  %v4170_v48 = vld [vmem:[%s6064_s1 + $0x2c0] ss:$8 sps:$4 sm:$0xff]  }
  0x5b   : > { %3854 = vmatprep.subr.msk.bf16.mxu1 %vm2292_vm0, %v4135_v50  ;;  %v4174_v50 = vld [vmem:[%s6064_s1 + $0x2d4] ss:$8 sps:$4 sm:$0xff]  }
  0x5f   : > { %2859 = vmatpush1.bf16.xpose.msra.mxu0 %v4065_v43  ;;  %v4219_v43 = vld [vmem:[%s6064_s1 + $0x394] ss:$8 sps:$4 sm:$0xff]  }
  0x60   : > { %3838 = vmatprep.subr.msk.bf16.mxu0 %vm2292_vm0, %v4069_v45  ;;  %v4221_v45 = vld [vmem:[%s6064_s1 + $0x390] ss:$8 sps:$4 sm:$0xff]  }
  0x62   : > { %2902 = vmatpush1.bf16.xpose.msra.mxu1 %v4137_v52  ;;  %v4176_v52 = vld [vmem:[%s6064_s1 + $0x2d0] ss:$8 sps:$4 sm:$0xff]  }
  0x63   : > { %3855 = vmatprep.subr.msk.bf16.mxu1 %vm2292_vm0, %v4141_v54  ;;  %v4180_v54 = vld [vmem:[%s6064_s1 + $0x2e4] ss:$8 sps:$4 sm:$0xff]  }
  0x67   : > { %2861 = vmatpush1.bf16.xpose.msra.mxu0 %v4071_v47  ;;  %v4225_v47 = vld [vmem:[%s6064_s1 + $0x3a4] ss:$8 sps:$4 sm:$0xff]  }
  0x68   : > { %3839 = vmatprep.subr.msk.bf16.mxu0 %vm2292_vm0, %v4075_v49  ;;  %v4227_v49 = vld [vmem:[%s6064_s1 + $0x3a0] ss:$8 sps:$4 sm:$0xff]  }
  0x6a   : > { %2904 = vmatpush1.bf16.xpose.msra.mxu1 %v4143_v56  ;;  %v4182_v56 = vld [vmem:[%s6064_s1 + $0x2e0] ss:$8 sps:$4 sm:$0xff]  }
  0x6b   : > { %3856 = vmatprep.subr.msk.bf16.mxu1 %vm2292_vm0, %v4147_v58  ;;  %v4186_v58 = vld [vmem:[%s6064_s1 + $0x2f4] ss:$8 sps:$4 sm:$0xff]  }
  0x6f   : > { %2863 = vmatpush1.bf16.xpose.msra.mxu0 %v4077_v51  ;;  %v4231_v51 = vld [vmem:[%s6064_s1 + $0x3b4] ss:$8 sps:$4 sm:$0xff]  }
  0x70   : > { %3840 = vmatprep.subr.msk.bf16.mxu0 %vm2292_vm0, %v4081_v53  ;;  %v4233_v53 = vld [vmem:[%s6064_s1 + $0x3b0] ss:$8 sps:$4 sm:$0xff]  }
  0x72   : > { %2906 = vmatpush1.bf16.xpose.msra.mxu1 %v4149_v60  ;;  %v4188_v60 = vld [vmem:[%s6064_s1 + $0x2f0] ss:$8 sps:$4 sm:$0xff]  }
  0x73   : > { %3857 = vmatprep.subr.msk.bf16.mxu1 %vm2292_vm0, %v4153_v62  ;;  %v4192_v62 = vld [vmem:[%s6064_s1 + $0x404] ss:$8 sps:$4 sm:$0xff]  }
  0x77   : > { %2865 = vmatpush1.bf16.xpose.msra.mxu0 %v4083_v55  ;;  %v4237_v55 = vld [vmem:[%s6064_s1 + $0x3c4] ss:$8 sps:$4 sm:$0xff]  }
  0x78   : > { %3841 = vmatprep.subr.msk.bf16.mxu0 %vm2292_vm0, %v4087_v57  ;;  %v4239_v57 = vld [vmem:[%s6064_s1 + $0x3c0] ss:$8 sps:$4 sm:$0xff]  }
  0x7a   : > { %2908 = vmatpush1.bf16.xpose.msra.mxu1 %v4155_v1  ;;  %v4194_v1 = vld [vmem:[%s6064_s1 + $0x400] ss:$8 sps:$4 sm:$0xff]  }
  0x7b   : > { %3858 = vmatprep.subr.msk.bf16.mxu1 %vm2292_vm0, %v4159_v3  ;;  %v4198_v3 = vld [vmem:[%s6064_s1 + $0x414] ss:$8 sps:$4 sm:$0xff]  }
  0x7f   : > { %2867 = vmatpush1.bf16.xpose.msra.mxu0 %v4089_v59  ;;  %v4243_v59 = vld [vmem:[%s6064_s1 + $0x3d4] ss:$8 sps:$4 sm:$0xff]  }
  0x80   : > { %3860 = vmatprep.subr.msk.bf16.mxu0 %vm2292_vm0, %v4096_v61  ;;  %v4245_v61 = vld [vmem:[%s6064_s1 + $0x3d0] ss:$8 sps:$4 sm:$0xff]  }
  0x82   : > { %2910 = vmatpush1.bf16.xpose.msra.mxu1 %v4161_v5  ;;  %v5094_v5 = vld [vmem:[%s4666_s20 + $0x4] ss:$8 sps:$4 sm:$0xff]  }
  0x83   : > { %3877 = vmatprep.subr.msk.bf16.mxu1 %vm2292_vm0, %v4165_v7  ;;  %v4257_v7 = vld [vmem:[%s6064_s1 + $0x3f0] ss:$8 sps:$4 sm:$0xff]  }
  0x86   : > { %2869 = vmatmul.mubr.bf16.vlgmr.msra.gmra.mrb[0].mxu0 %v4844_v63 }
  0x87   : > { %2923 = vmatpush1.bf16.xpose.msra.mxu0 %v4098_v0  ;;  %3876 = vmatprep.mubr.msk.bf16.mxu0 %vm2292_vm0, %v4671_v14  ;;  %v4249_v0 = vld [vmem:[%s6064_s1 + $0x3e4] ss:$8 sps:$4 sm:$0xff]  }
  0x88   : > { %3861 = vmatprep.subr.msk.bf16.mxu0 %vm2292_vm0, %v4102_v2  ;;  %v4251_v2 = vld [vmem:[%s6064_s1 + $0x3e0] ss:$8 sps:$4 sm:$0xff]  }
  0x89   : > { %2912 = vmatmul.mubr.bf16.vlgmr.msra.gmra.mrb[0].mxu1 %v4844_v63 }
  0x8a   : > { %2966 = vmatpush1.bf16.xpose.msra.mxu1 %v4167_v9  ;;  %3893 = vmatprep.mubr.msk.bf16.mxu1 %vm2292_vm0, %v4671_v14  ;;  %v4179_v14 = vld [vmem:[%s6064_s1 + $0x320] ss:$8 sps:$4 sm:$0xff]   ;;  %v4261_v9 = vld [vmem:[%s6064_s1 + $0x504] ss:$8 sps:$4 sm:$0xff]  }
  0x8b   : > { %3878 = vmatprep.subr.msk.bf16.mxu1 %vm2292_vm0, %v4171_v11  ;;  %v4263_v11 = vld [vmem:[%s6064_s1 + $0x500] ss:$8 sps:$4 sm:$0xff]  }
  0x8f   : > { %2925 = vmatpush1.bf16.xpose.msra.mxu0 %v4104_v4  ;;  %v4255_v4 = vld [vmem:[%s6064_s1 + $0x3f4] ss:$8 sps:$4 sm:$0xff]  }
  0x90   : > { %3862 = vmatprep.subr.msk.bf16.mxu0 %vm2292_vm0, %v4108_v6  ;;  %v4200_v6 = vld [vmem:[%s6064_s1 + $0x410] ss:$8 sps:$4 sm:$0xff]  }
  0x92   : > { %2968 = vmatpush1.bf16.xpose.msra.mxu1 %v4173_v13  ;;  %v4267_v13 = vld [vmem:[%s6064_s1 + $0x514] ss:$8 sps:$4 sm:$0xff]  }
  0x93   : > { %3879 = vmatprep.subr.msk.bf16.mxu1 %vm2292_vm0, %v4177_v16  ;;  %v4269_v16 = vld [vmem:[%s6064_s1 + $0x510] ss:$8 sps:$4 sm:$0xff]  }
  0x97   : > { %2927 = vmatpush1.bf16.xpose.msra.mxu0 %v4110_v8  ;;  %v4204_v8 = vld [vmem:[%s6064_s1 + $0x424] ss:$8 sps:$4 sm:$0xff]  }
  0x98   : > { %3863 = vmatprep.subr.msk.bf16.mxu0 %vm2292_vm0, %v4114_v10  ;;  %v4206_v10 = vld [vmem:[%s6064_s1 + $0x420] ss:$8 sps:$4 sm:$0xff]  }
  0x9a   : > { %2970 = vmatpush1.bf16.xpose.msra.mxu1 %v4179_v14  ;;  %v4273_v14 = vld [vmem:[%s6064_s1 + $0x524] ss:$8 sps:$4 sm:$0xff]  }
  0x9b   : > { %3880 = vmatprep.subr.msk.bf16.mxu1 %vm2292_vm0, %v4183_v19  ;;  %v4275_v19 = vld [vmem:[%s6064_s1 + $0x520] ss:$8 sps:$4 sm:$0xff]  }
  0x9f   : > { %2929 = vmatpush1.bf16.xpose.msra.mxu0 %v4116_v12  ;;  %v4210_v12 = vld [vmem:[%s6064_s1 + $0x434] ss:$8 sps:$4 sm:$0xff]  }
  0xa0   : > { %3864 = vmatprep.subr.msk.bf16.mxu0 %vm2292_vm0, %v4120_v15  ;;  %v4212_v15 = vld [vmem:[%s6064_s1 + $0x430] ss:$8 sps:$4 sm:$0xff]  }
  0xa2   : > { %2972 = vmatpush1.bf16.xpose.msra.mxu1 %v4185_v21  ;;  %v4279_v21 = vld [vmem:[%s6064_s1 + $0x534] ss:$8 sps:$4 sm:$0xff]  }
  0xa3   : > { %3881 = vmatprep.subr.msk.bf16.mxu1 %vm2292_vm0, %v4189_v23  ;;  %v4281_v23 = vld [vmem:[%s6064_s1 + $0x530] ss:$8 sps:$4 sm:$0xff]  }
  0xa7   : > { %2931 = vmatpush1.bf16.xpose.msra.mxu0 %v4122_v17  ;;  %v4216_v17 = vld [vmem:[%s6064_s1 + $0x444] ss:$8 sps:$4 sm:$0xff]  }
  0xa8   : > { %3865 = vmatprep.subr.msk.bf16.mxu0 %vm2292_vm0, %v4126_v18  ;;  %v4218_v18 = vld [vmem:[%s6064_s1 + $0x440] ss:$8 sps:$4 sm:$0xff]  }
  0xaa   : > { %2974 = vmatpush1.bf16.xpose.msra.mxu1 %v4191_v25  ;;  %v4285_v25 = vld [vmem:[%s6064_s1 + $0x544] ss:$8 sps:$4 sm:$0xff]  }
  0xab   : > { %3882 = vmatprep.subr.msk.bf16.mxu1 %vm2292_vm0, %v4195_v27  ;;  %v4287_v27 = vld [vmem:[%s6064_s1 + $0x540] ss:$8 sps:$4 sm:$0xff]  }
  0xaf   : > { %2933 = vmatpush1.bf16.xpose.msra.mxu0 %v4128_v20  ;;  %v4222_v20 = vld [vmem:[%s6064_s1 + $0x454] ss:$8 sps:$4 sm:$0xff]  }
  0xb0   : > { %3866 = vmatprep.subr.msk.bf16.mxu0 %vm2292_vm0, %v4132_v22  ;;  %v4224_v22 = vld [vmem:[%s6064_s1 + $0x450] ss:$8 sps:$4 sm:$0xff]  }
  0xb2   : > { %2976 = vmatpush1.bf16.xpose.msra.mxu1 %v4197_v29  ;;  %v4291_v29 = vld [vmem:[%s6064_s1 + $0x554] ss:$8 sps:$4 sm:$0xff]  }
  0xb3   : > { %3883 = vmatprep.subr.msk.bf16.mxu1 %vm2292_vm0, %v4201_v31  ;;  %v4293_v31 = vld [vmem:[%s6064_s1 + $0x550] ss:$8 sps:$4 sm:$0xff]  }
  0xb7   : > { %2935 = vmatpush1.bf16.xpose.msra.mxu0 %v4134_v24  ;;  %v4228_v24 = vld [vmem:[%s6064_s1 + $0x464] ss:$8 sps:$4 sm:$0xff]  }
  0xb8   : > { %3867 = vmatprep.subr.msk.bf16.mxu0 %vm2292_vm0, %v4138_v26  ;;  %v4230_v26 = vld [vmem:[%s6064_s1 + $0x460] ss:$8 sps:$4 sm:$0xff]  }
  0xba   : > { %2978 = vmatpush1.bf16.xpose.msra.mxu1 %v4203_v33  ;;  %v4297_v33 = vld [vmem:[%s6064_s1 + $0x564] ss:$8 sps:$4 sm:$0xff]  }
  0xbb   : > { %3884 = vmatprep.subr.msk.bf16.mxu1 %vm2292_vm0, %v4207_v35  ;;  %v4299_v35 = vld [vmem:[%s6064_s1 + $0x560] ss:$8 sps:$4 sm:$0xff]  }
  0xbf   : > { %2937 = vmatpush1.bf16.xpose.msra.mxu0 %v4140_v28  ;;  %v4234_v28 = vld [vmem:[%s6064_s1 + $0x474] ss:$8 sps:$4 sm:$0xff]  }
  0xc0   : > { %3868 = vmatprep.subr.msk.bf16.mxu0 %vm2292_vm0, %v4144_v30  ;;  %v4236_v30 = vld [vmem:[%s6064_s1 + $0x470] ss:$8 sps:$4 sm:$0xff]  }
  0xc2   : > { %2980 = vmatpush1.bf16.xpose.msra.mxu1 %v4209_v37  ;;  %v4303_v37 = vld [vmem:[%s6064_s1 + $0x574] ss:$8 sps:$4 sm:$0xff]  }
  0xc3   : > { %3885 = vmatprep.subr.msk.bf16.mxu1 %vm2292_vm0, %v4213_v39  ;;  %v4248_v39 = vld [vmem:[%s6064_s1 + $0x490] ss:$8 sps:$4 sm:$0xff]  }
  0xc7   : > { %2939 = vmatpush1.bf16.xpose.msra.mxu0 %v4146_v32  ;;  %v4240_v32 = vld [vmem:[%s6064_s1 + $0x484] ss:$8 sps:$4 sm:$0xff]  }
  0xc8   : > { %3869 = vmatprep.subr.msk.bf16.mxu0 %vm2292_vm0, %v4150_v34  ;;  %v4242_v34 = vld [vmem:[%s6064_s1 + $0x480] ss:$8 sps:$4 sm:$0xff]  }
  0xca   : > { %2982 = vmatpush1.bf16.xpose.msra.mxu1 %v4215_v41  ;;  %v4252_v41 = vld [vmem:[%s6064_s1 + $0x4a4] ss:$8 sps:$4 sm:$0xff]  }
  0xcb   : > { %3886 = vmatprep.subr.msk.bf16.mxu1 %vm2292_vm0, %v4219_v43 }
  0xcf   : > { %2941 = vmatpush1.bf16.xpose.msra.mxu0 %v4152_v36  ;;  %v4246_v36 = vld [vmem:[%s6064_s1 + $0x494] ss:$8 sps:$4 sm:$0xff]  }
  0xd0   : > { %3870 = vmatprep.subr.msk.bf16.mxu0 %vm2292_vm0, %v4156_v38  ;;  %v548_v38 = vlaneseq }
  0xd2   : > { %2984 = vmatpush1.bf16.xpose.msra.mxu1 %v4221_v45  ;;  %v5225_v43 = vshrl.u32 %v548_v38, 7  ;;  %v4254_v45 = vld [vmem:[%s6064_s1 + $0x4a0] ss:$8 sps:$4 sm:$0xff]   ;;  %v4357_v38 = vld [vmem:[%s6064_s1 + $0x704] ss:$8 sps:$4 sm:$0xff]  }
  0xd3   : > { %3887 = vmatprep.subr.msk.bf16.mxu1 %vm2292_vm0, %v4225_v47 }
  0xd4   : > { %v5241_v47 = vsub.s32 1, %v5225_v43 }
  0xd7   : > { %2943 = vmatpush1.bf16.xpose.msra.mxu0 %v4158_v40  ;;  %v4305_v40 = vld [vmem:[%s6064_s1 + $0x570] ss:$8 sps:$4 sm:$0xff]  }
  0xd8   : > { %3871 = vmatprep.subr.msk.bf16.mxu0 %vm2292_vm0, %v4162_v42  ;;  %v4309_v42 = vld [vmem:[%s6064_s1 + $0x584] ss:$8 sps:$4 sm:$0xff]  }
  0xda   : > { %2986 = vmatpush1.bf16.xpose.msra.mxu1 %v4227_v49  ;;  %v4258_v49 = vld [vmem:[%s6064_s1 + $0x4b4] ss:$8 sps:$4 sm:$0xff]  }
  0xdb   : > { %3888 = vmatprep.subr.msk.bf16.mxu1 %vm2292_vm0, %v4231_v51 }
  0xdf   : > { %2945 = vmatpush1.bf16.xpose.msra.mxu0 %v4164_v44  ;;  %v5230_v44 = vsub.s32 0, %v5225_v43 }
  0xe0   : > { %3872 = vmatprep.subr.msk.bf16.mxu0 %vm2292_vm0, %v4168_v46  ;;  %v5238_v46 = vld [vmem:[%s6065_s2] sm:$0xff] }
  0xe1   : > { %v551_v51 = vrot.slane %v5238_v46, %v5230_v44 }
  0xe2   : > { %2988 = vmatpush1.bf16.xpose.msra.mxu1 %v4233_v53 }
  0xe3   : > { %3889 = vmatprep.subr.msk.bf16.mxu1 %vm2292_vm0, %v4237_v55 }
  0xe7   : > { %2947 = vmatpush1.bf16.xpose.msra.mxu0 %v4170_v48  ;;  %v4311_v48 = vld [vmem:[%s6064_s1 + $0x580] ss:$8 sps:$4 sm:$0xff]  }
  0xe8   : > { %3873 = vmatprep.subr.msk.bf16.mxu0 %vm2292_vm0, %v4174_v50  ;;  %v4315_v50 = vld [vmem:[%s6064_s1 + $0x594] ss:$8 sps:$4 sm:$0xff]  }
  0xea   : > { %2990 = vmatpush1.bf16.xpose.msra.mxu1 %v4239_v57 }
  0xeb   : > { %3890 = vmatprep.subr.msk.bf16.mxu1 %vm2292_vm0, %v4243_v59  ;;  %v4317_v59 = vld [vmem:[%s6064_s1 + $0x590] ss:$8 sps:$4 sm:$0xff]  }
  0xef   : > { %2949 = vmatpush1.bf16.xpose.msra.mxu0 %v4176_v52  ;;  %v555_v52 = vrot.slane %v5238_v46, %v5241_v47 }
  0xf0   : > { %3874 = vmatprep.subr.msk.bf16.mxu0 %vm2292_vm0, %v4180_v54 }
  0xf2   : > { %2992 = vmatpush1.bf16.xpose.msra.mxu1 %v4245_v61 }
  0xf3   : > { %3891 = vmatprep.subr.msk.bf16.mxu1 %vm2292_vm0, %v4249_v0  ;;  %v4321_v0 = vld [vmem:[%s6064_s1 + $0x5a4] ss:$8 sps:$4 sm:$0xff]  }
  0xf7   : > { %2951 = vmatpush1.bf16.xpose.msra.mxu0 %v4182_v56 }
  0xf8   : > { %3875 = vmatprep.subr.msk.bf16.mxu0 %vm2292_vm0, %v4186_v58  ;;  %v4260_v58 = vld [vmem:[%s6064_s1 + $0x4b0] ss:$8 sps:$4 sm:$0xff]  }
  0xfa   : > { %2994 = vmatpush1.bf16.xpose.msra.mxu1 %v4251_v2  ;;  %v5283_v2 = vsub.s32 2, %v5225_v43 }
  0xfb   : > { %3892 = vmatprep.subr.msk.bf16.mxu1 %vm2292_vm0, %v4255_v4  ;;  %v4323_v4 = vld [vmem:[%s6064_s1 + $0x5a0] ss:$8 sps:$4 sm:$0xff]  }
  0xff   : > { %2953 = vmatpush1.bf16.xpose.msra.mxu0 %v4188_v60 }
 0x100   : > { %3894 = vmatprep.subr.msk.bf16.mxu0 %vm2292_vm0, %v4192_v62  ;;  %v4264_v62 = vld [vmem:[%s6064_s1 + $0x4c4] ss:$8 sps:$4 sm:$0xff]  }
 0x102   : > { %2996 = vmatpush1.bf16.xpose.msra.mxu1 %v4257_v7  ;;  %v4270_v7 = vld [vmem:[%s6064_s1 + $0x4d4] ss:$8 sps:$4 sm:$0xff]  }
 0x103   : > { %3911 = vmatprep.subr.msk.bf16.mxu1 %vm2292_vm0, %v4261_v9  ;;  %v559_v9 = vrot.slane %v5238_v46, %v5283_v2 }
 0x106   : > { %2955 = vmatmul.mubr.bf16.vlgmr.msra.gmra.mrb[4].mxu0 %v4844_v63 }
 0x107   : > { %3009 = vmatpush1.bf16.xpose.msra.mxu0 %v4194_v1  ;;  %3910 = vmatprep.mubr.msk.bf16.mxu0 %vm2292_vm0, %v5094_v5 }
 0x108   : > { %3895 = vmatprep.subr.msk.bf16.mxu0 %vm2292_vm0, %v4198_v3  ;;  %v4266_v3 = vld [vmem:[%s6064_s1 + $0x4c0] ss:$8 sps:$4 sm:$0xff]  }
 0x109   : > { %2998 = vmatmul.mubr.bf16.vlgmr.msra.gmra.mrb[4].mxu1 %v4844_v63 }
 0x10a   : > { %3052 = vmatpush1.bf16.xpose.msra.mxu1 %v4263_v11  ;;  %3927 = vmatprep.mubr.msk.bf16.mxu1 %vm2292_vm0, %v5094_v5 }
 0x10b   : > { %3912 = vmatprep.subr.msk.bf16.mxu1 %vm2292_vm0, %v4267_v13 }
 0x10f   : > { %3011 = vmatpush1.bf16.xpose.msra.mxu0 %v4200_v6  ;;  %v5292_v6 = vsub.s32 3, %v5225_v43 }
 0x110   : > { %3896 = vmatprep.subr.msk.bf16.mxu0 %vm2292_vm0, %v4204_v8  ;;  %v4327_v8 = vld [vmem:[%s6064_s1 + $0x5b4] ss:$8 sps:$4 sm:$0xff]  }
 0x112   : > { %3054 = vmatpush1.bf16.xpose.msra.mxu1 %v4269_v16 }
 0x113   : > { %3913 = vmatprep.subr.msk.bf16.mxu1 %vm2292_vm0, %v4273_v14  ;;  %v4329_v14 = vld [vmem:[%s6064_s1 + $0x5b0] ss:$8 sps:$4 sm:$0xff]  }
 0x117   : > { %3013 = vmatpush1.bf16.xpose.msra.mxu0 %v4206_v10  ;;  %v563_v10 = vrot.slane %v5238_v46, %v5292_v6 }
 0x118   : > { %3897 = vmatprep.subr.msk.bf16.mxu0 %vm2292_vm0, %v4210_v12 }
 0x11a   : > { %3056 = vmatpush1.bf16.xpose.msra.mxu1 %v4275_v19 }
 0x11b   : > { %3914 = vmatprep.subr.msk.bf16.mxu1 %vm2292_vm0, %v4279_v21  ;;  %v4333_v21 = vld [vmem:[%s6064_s1 + $0x5c4] ss:$8 sps:$4 sm:$0xff]  }
 0x11f   : > { %3015 = vmatpush1.bf16.xpose.msra.mxu0 %v4212_v15  ;;  %v4272_v15 = vld [vmem:[%s6064_s1 + $0x4d0] ss:$8 sps:$4 sm:$0xff]  }
 0x120   : > { %3898 = vmatprep.subr.msk.bf16.mxu0 %vm2292_vm0, %v4216_v17 }
 0x122   : > { %3058 = vmatpush1.bf16.xpose.msra.mxu1 %v4281_v23  ;;  %v4278_v23 = vld [vmem:[%s6064_s1 + $0x4e0] ss:$8 sps:$4 sm:$0xff]  }
 0x123   : > { %3915 = vmatprep.subr.msk.bf16.mxu1 %vm2292_vm0, %v4285_v25  ;;  %v4282_v25 = vld [vmem:[%s6064_s1 + $0x4f4] ss:$8 sps:$4 sm:$0xff]  }
 0x127   : > { %3017 = vmatpush1.bf16.xpose.msra.mxu0 %v4218_v18  ;;  %v4276_v18 = vld [vmem:[%s6064_s1 + $0x4e4] ss:$8 sps:$4 sm:$0xff]  }
 0x128   : > { %3899 = vmatprep.subr.msk.bf16.mxu0 %vm2292_vm0, %v4222_v20 }
 0x12a   : > { %3060 = vmatpush1.bf16.xpose.msra.mxu1 %v4287_v27  ;;  %v4284_v27 = vld [vmem:[%s6064_s1 + $0x4f0] ss:$8 sps:$4 sm:$0xff]  }
 0x12b   : > { %3916 = vmatprep.subr.msk.bf16.mxu1 %vm2292_vm0, %v4291_v29  ;;  %v4288_v29 = vld [vmem:[%s6064_s1 + $0x604] ss:$8 sps:$4 sm:$0xff]  }
 0x12f   : > { %3019 = vmatpush1.bf16.xpose.msra.mxu0 %v4224_v22 }
 0x130   : > { %3900 = vmatprep.subr.msk.bf16.mxu0 %vm2292_vm0, %v4228_v24  ;;  %v4335_v24 = vld [vmem:[%s6064_s1 + $0x5c0] ss:$8 sps:$4 sm:$0xff]  }
 0x132   : > { %3062 = vmatpush1.bf16.xpose.msra.mxu1 %v4293_v31  ;;  %v4290_v31 = vld [vmem:[%s6064_s1 + $0x600] ss:$8 sps:$4 sm:$0xff]  }
 0x133   : > { %3917 = vmatprep.subr.msk.bf16.mxu1 %vm2292_vm0, %v4297_v33  ;;  %v4294_v33 = vld [vmem:[%s6064_s1 + $0x614] ss:$8 sps:$4 sm:$0xff]  }
 0x137   : > { %3021 = vmatpush1.bf16.xpose.msra.mxu0 %v4230_v26  ;;  %v4339_v26 = vld [vmem:[%s6064_s1 + $0x5d4] ss:$8 sps:$4 sm:$0xff]  }
 0x138   : > { %3901 = vmatprep.subr.msk.bf16.mxu0 %vm2292_vm0, %v4234_v28  ;;  %v4341_v28 = vld [vmem:[%s6064_s1 + $0x5d0] ss:$8 sps:$4 sm:$0xff]  }
 0x13a   : > { %3064 = vmatpush1.bf16.xpose.msra.mxu1 %v4299_v35  ;;  %v4296_v35 = vld [vmem:[%s6064_s1 + $0x610] ss:$8 sps:$4 sm:$0xff]  }
 0x13b   : > { %3918 = vmatprep.subr.msk.bf16.mxu1 %vm2292_vm0, %v4303_v37  ;;  %v4300_v37 = vld [vmem:[%s6064_s1 + $0x624] ss:$8 sps:$4 sm:$0xff]  }
 0x13f   : > { %3023 = vmatpush1.bf16.xpose.msra.mxu0 %v4236_v30  ;;  %v4345_v30 = vld [vmem:[%s6064_s1 + $0x5e4] ss:$8 sps:$4 sm:$0xff]  }
 0x140   : > { %3902 = vmatprep.subr.msk.bf16.mxu0 %vm2292_vm0, %v4240_v32  ;;  %v4347_v32 = vld [vmem:[%s6064_s1 + $0x5e0] ss:$8 sps:$4 sm:$0xff]  }
 0x142   : > { %3066 = vmatpush1.bf16.xpose.msra.mxu1 %v4305_v40  ;;  %v4359_v40 = vld [vmem:[%s6064_s1 + $0x700] ss:$8 sps:$4 sm:$0xff]  }
 0x143   : > { %3919 = vmatprep.subr.msk.bf16.mxu1 %vm2292_vm0, %v4309_v42  ;;  %v4363_v42 = vld [vmem:[%s6064_s1 + $0x714] ss:$8 sps:$4 sm:$0xff]  }
 0x147   : > { %3025 = vmatpush1.bf16.xpose.msra.mxu0 %v4242_v34  ;;  %v4351_v34 = vld [vmem:[%s6064_s1 + $0x5f4] ss:$8 sps:$4 sm:$0xff]  }
 0x148   : > { %3903 = vmatprep.subr.msk.bf16.mxu0 %vm2292_vm0, %v4246_v36  ;;  %v4353_v36 = vld [vmem:[%s6064_s1 + $0x5f0] ss:$8 sps:$4 sm:$0xff]  }
 0x14a   : > { %3068 = vmatpush1.bf16.xpose.msra.mxu1 %v4311_v48  ;;  %v4365_v48 = vld [vmem:[%s6064_s1 + $0x710] ss:$8 sps:$4 sm:$0xff]  }
 0x14b   : > { %3920 = vmatprep.subr.msk.bf16.mxu1 %vm2292_vm0, %v4315_v50  ;;  %v4314_v50 = vld [vmem:[%s6064_s1 + $0x640] ss:$8 sps:$4 sm:$0xff]  }
 0x14f   : > { %3027 = vmatpush1.bf16.xpose.msra.mxu0 %v4248_v39  ;;  %v4302_v39 = vld [vmem:[%s6064_s1 + $0x620] ss:$8 sps:$4 sm:$0xff]  }
 0x150   : > { %3904 = vmatprep.subr.msk.bf16.mxu0 %vm2292_vm0, %v4252_v41  ;;  %v4306_v41 = vld [vmem:[%s6064_s1 + $0x634] ss:$8 sps:$4 sm:$0xff]  }
 0x152   : > { %3070 = vmatpush1.bf16.xpose.msra.mxu1 %v4317_v59  ;;  %v4383_v59 = vld [vmem:[%s6064_s1 + $0x740] ss:$8 sps:$4 sm:$0xff]  }
 0x153   : > { %3921 = vmatprep.subr.msk.bf16.mxu1 %vm2292_vm0, %v4321_v0  ;;  %v4389_v0 = vld [vmem:[%s6064_s1 + $0x750] ss:$8 sps:$4 sm:$0xff]  }
 0x157   : > { %3029 = vmatpush1.bf16.xpose.msra.mxu0 %v4254_v45  ;;  %v4308_v45 = vld [vmem:[%s6064_s1 + $0x630] ss:$8 sps:$4 sm:$0xff]  }
 0x158   : > { %3905 = vmatprep.subr.msk.bf16.mxu0 %vm2292_vm0, %v4258_v49  ;;  %v4369_v49 = vld [vmem:[%s6064_s1 + $0x724] ss:$8 sps:$4 sm:$0xff]  }
 0x159   : > { %v2870_v53 = vpop.f32.mrb[0].mxu0 }
 0x15a   : > { %v2871_v54 = vadd.f32 %v2870_v53, %v551_v51  ;;  %v2872_v55 = vpop.f32.mrb[1].mxu0  ;;  %3072 = vmatpush1.bf16.xpose.msra.mxu1 %v4323_v4  ;;  %v4375_v53 = vld [vmem:[%s6064_s1 + $0x734] ss:$8 sps:$4 sm:$0xff]   ;;  %v4338_v4 = vld [vmem:[%s6064_s1 + $0x680] ss:$8 sps:$4 sm:$0xff]  }
 0x15b   : > { %v2873_v56 = vadd.f32 %v2872_v55, %v555_v52  ;;  %v2874_v57 = vpop.f32.mrb[2].mxu0  ;;  %3922 = vmatprep.subr.msk.bf16.mxu1 %vm2292_vm0, %v4327_v8  ;;  %v4377_v55 = vld [vmem:[%s6064_s1 + $0x730] ss:$8 sps:$4 sm:$0xff]   ;;  %v4342_v8 = vld [vmem:[%s6064_s1 + $0x694] ss:$8 sps:$4 sm:$0xff]  }
 0x15c   : > { %3350 = vst [vmem:[%s5262_s27] sm:$0xff] %v2871_v54  ;;  %v2875_v60 = vadd.f32 %v2874_v57, %v551_v51  ;;  %v2876_v61 = vpop.f32.mrb[3].mxu0  ;;  %v2913_v11 = vpop.f32.mrb[0].mxu1  ;;  %v4371_v51 = vld [vmem:[%s6064_s1 + $0x720] ss:$8 sps:$4 sm:$0xff]   ;;  %v4320_v54 = vld [vmem:[%s6064_s1 + $0x650] ss:$8 sps:$4 sm:$0xff]  }
 0x15d   : > { %3351 = vst [vmem:[%s5262_s27 + $0x8] sm:$0xff] %v2873_v56  ;;  %v2877_v1 = vadd.f32 %v2876_v61, %v555_v52  ;;  %v2914_v12 = vadd.f32 %v2913_v11, %v559_v9  ;;  %v2915_v13 = vpop.f32.mrb[1].mxu1  ;;  %v4318_v52 = vld [vmem:[%s6064_s1 + $0x654] ss:$8 sps:$4 sm:$0xff]   ;;  %v4324_v56 = vld [vmem:[%s6064_s1 + $0x664] ss:$8 sps:$4 sm:$0xff]  }
 0x15e   : > { %3373 = vst [vmem:[%s5262_s27 + $0xb8] sm:$0xff] %v2875_v60  ;;  %v2916_v16 = vadd.f32 %v2915_v13, %v563_v10  ;;  %v2917_v17 = vpop.f32.mrb[2].mxu1  ;;  %v4381_v57 = vld [vmem:[%s6064_s1 + $0x744] ss:$8 sps:$4 sm:$0xff]   ;;  %v4330_v60 = vld [vmem:[%s6064_s1 + $0x674] ss:$8 sps:$4 sm:$0xff]  }
 0x15f   : > { %3374 = vst [vmem:[%s5262_s27 + $0xc0] sm:$0xff] %v2877_v1  ;;  %3031 = vmatpush1.bf16.xpose.msra.mxu0 %v4260_v58  ;;  %3352 = vst [vmem:[%s5262_s27 + $0x10] sm:$0xff] %v2914_v12  ;;  %v2918_v19 = vadd.f32 %v2917_v17, %v559_v9  ;;  %v2919_v20 = vpop.f32.mrb[3].mxu1  ;;  %v4326_v58 = vld [vmem:[%s6064_s1 + $0x660] ss:$8 sps:$4 sm:$0xff]   ;;  %v5505_v17 = vsub.s32 5, %v5225_v43 }
 0x160   : > { %3906 = vmatprep.subr.msk.bf16.mxu0 %vm2292_vm0, %v4264_v62  ;;  %3353 = vst [vmem:[%s5262_s27 + $0x18] sm:$0xff] %v2916_v16  ;;  %v2920_v22 = vadd.f32 %v2919_v20, %v563_v10  ;;  %v4387_v61 = vld [vmem:[%s6064_s1 + $0x754] ss:$8 sps:$4 sm:$0xff]   ;;  %v4332_v62 = vld [vmem:[%s6064_s1 + $0x670] ss:$8 sps:$4 sm:$0xff]  }
 0x161   : > { %3375 = vst [vmem:[%s5262_s27 + $0xc8] sm:$0xff] %v2918_v19  ;;  %v4336_v1 = vld [vmem:[%s6064_s1 + $0x684] ss:$8 sps:$4 sm:$0xff]   ;;  %v4399_v9 = vld [vmem:[%s6064_s1 + $0x774] ss:$8 sps:$4 sm:$0xff]  }
 0x162   : > { %3376 = vst [vmem:[%s5262_s27 + $0xd0] sm:$0xff] %v2920_v22  ;;  %3074 = vmatpush1.bf16.xpose.msra.mxu1 %v4329_v14  ;;  %v4344_v10 = vld [vmem:[%s6064_s1 + $0x690] ss:$8 sps:$4 sm:$0xff]   ;;  %v4348_v12 = vld [vmem:[%s6064_s1 + $0x6a4] ss:$8 sps:$4 sm:$0xff]  }
 0x163   : > { %3923 = vmatprep.subr.msk.bf16.mxu1 %vm2292_vm0, %v4333_v21  ;;  %v4401_v11 = vld [vmem:[%s6064_s1 + $0x770] ss:$8 sps:$4 sm:$0xff]   ;;  %v4405_v13 = vld [vmem:[%s6064_s1 + $0x784] ss:$8 sps:$4 sm:$0xff]   ;;  %v4350_v16 = vld [vmem:[%s6064_s1 + $0x6a0] ss:$8 sps:$4 sm:$0xff]   ;;  %v571_v21 = vrot.slane %v5238_v46, %v5505_v17 }
 0x164   : > { %v4407_v14 = vld [vmem:[%s6064_s1 + $0x780] ss:$8 sps:$4 sm:$0xff]   ;;  %v4411_v19 = vld [vmem:[%s6064_s1 + $0x794] ss:$8 sps:$4 sm:$0xff]  }
 0x167   : > { %3033 = vmatpush1.bf16.xpose.msra.mxu0 %v4266_v3  ;;  %v4393_v3 = vld [vmem:[%s6064_s1 + $0x764] ss:$8 sps:$4 sm:$0xff]  }
 0x168   : > { %3907 = vmatprep.subr.msk.bf16.mxu0 %vm2292_vm0, %v4270_v7  ;;  %v4395_v7 = vld [vmem:[%s6064_s1 + $0x760] ss:$8 sps:$4 sm:$0xff]  }
 0x16a   : > { %3076 = vmatpush1.bf16.xpose.msra.mxu1 %v4335_v24 }
 0x16b   : > { %3924 = vmatprep.subr.msk.bf16.mxu1 %vm2292_vm0, %v4339_v26 }
 0x16f   : > { %3035 = vmatpush1.bf16.xpose.msra.mxu0 %v4272_v15  ;;  %v5499_v15 = vsub.s32 4, %v5225_v43 }
 0x170   : > { %3908 = vmatprep.subr.msk.bf16.mxu0 %vm2292_vm0, %v4276_v18  ;;  %v4354_v18 = vld [vmem:[%s6064_s1 + $0x6b4] ss:$8 sps:$4 sm:$0xff]  }
 0x171   : > { %v567_v20 = vrot.slane %v5238_v46, %v5499_v15 }
 0x172   : > { %3078 = vmatpush1.bf16.xpose.msra.mxu1 %v4341_v28  ;;  %v4413_v28 = vld [vmem:[%s6064_s1 + $0x790] ss:$8 sps:$4 sm:$0xff]  }
 0x173   : > { %3925 = vmatprep.subr.msk.bf16.mxu1 %vm2292_vm0, %v4345_v30 }
 0x177   : > { %3037 = vmatpush1.bf16.xpose.msra.mxu0 %v4278_v23 }
 0x178   : > { %3909 = vmatprep.subr.msk.bf16.mxu0 %vm2292_vm0, %v4282_v25 }
 0x17a   : > { %3080 = vmatpush1.bf16.xpose.msra.mxu1 %v4347_v32  ;;  %v4417_v32 = vld [vmem:[%s6064_s1 + $0x7a4] ss:$8 sps:$4 sm:$0xff]  }
 0x17b   : > { %3926 = vmatprep.subr.msk.bf16.mxu1 %vm2292_vm0, %v4351_v34  ;;  %v5541_v34 = vsub.s32 6, %v5225_v43 }
 0x17f   : > { %3039 = vmatpush1.bf16.xpose.msra.mxu0 %v4284_v27  ;;  %v4356_v27 = vld [vmem:[%s6064_s1 + $0x6b0] ss:$8 sps:$4 sm:$0xff]  }
 0x180   : > { %3928 = vmatprep.subr.msk.bf16.mxu0 %vm2292_vm0, %v4288_v29 }
 0x182   : > { %3082 = vmatpush1.bf16.xpose.msra.mxu1 %v4353_v36  ;;  %v4419_v36 = vld [vmem:[%s6064_s1 + $0x7a0] ss:$8 sps:$4 sm:$0xff]  }
 0x183   : > { %3945 = vmatprep.subr.msk.bf16.mxu1 %vm2292_vm0, %v4357_v38  ;;  %v4366_v38 = vld [vmem:[%s6064_s1 + $0x6d4] ss:$8 sps:$4 sm:$0xff]  }
 0x186   : > { %3041 = vmatmul.mubr.bf16.vlgmr.msra.gmra.mrb[8].mxu0 %v4844_v63 }
 0x187   : > { %3095 = vmatpush1.bf16.xpose.msra.mxu0 %v4290_v31  ;;  %3944 = vmatprep.mubr.msk.bf16.mxu0 %vm2292_vm0, %v5094_v5  ;;  %v4360_v31 = vld [vmem:[%s6064_s1 + $0x6c4] ss:$8 sps:$4 sm:$0xff]  }
 0x188   : > { %3929 = vmatprep.subr.msk.bf16.mxu0 %vm2292_vm0, %v4294_v33 }
 0x189   : > { %3084 = vmatmul.mubr.bf16.vlgmr.msra.gmra.mrb[8].mxu1 %v4844_v63  ;;  %v4312_v63 = vld [vmem:[%s6064_s1 + $0x644] ss:$8 sps:$4 sm:$0xff]  }
 0x18a   : > { %3138 = vmatpush1.bf16.xpose.msra.mxu1 %v4359_v40  ;;  %3961 = vmatprep.mubr.msk.bf16.mxu1 %vm2292_vm0, %v5094_v5  ;;  %v575_v40 = vrot.slane %v5238_v46, %v5541_v34 }
 0x18b   : > { %3946 = vmatprep.subr.msk.bf16.mxu1 %vm2292_vm0, %v4363_v42 }
 0x18f   : > { %3097 = vmatpush1.bf16.xpose.msra.mxu0 %v4296_v35  ;;  %v4362_v35 = vld [vmem:[%s6064_s1 + $0x6c0] ss:$8 sps:$4 sm:$0xff]  }
 0x190   : > { %3930 = vmatprep.subr.msk.bf16.mxu0 %vm2292_vm0, %v4300_v37  ;;  %v578_v37 = vsub.s32 7, %v5225_v43 }
 0x192   : > { %3140 = vmatpush1.bf16.xpose.msra.mxu1 %v4365_v48 }
 0x193   : > { %3947 = vmatprep.subr.msk.bf16.mxu1 %vm2292_vm0, %v4369_v49 }
 0x197   : > { %3099 = vmatpush1.bf16.xpose.msra.mxu0 %v4302_v39  ;;  %v4423_v39 = vld [vmem:[%s6064_s1 + $0x7b4] ss:$8 sps:$4 sm:$0xff]  }
 0x198   : > { %3931 = vmatprep.subr.msk.bf16.mxu0 %vm2292_vm0, %v4306_v41  ;;  %v579_v41 = vrot.slane %v5238_v46, %v578_v37  ;;  %v4372_v46 = vld [vmem:[%s6064_s1 + $0x6e4] ss:$8 sps:$4 sm:$0xff]  }
 0x19a   : > { %3142 = vmatpush1.bf16.xpose.msra.mxu1 %v4371_v51  ;;  %v4425_v51 = vld [vmem:[%s6064_s1 + $0x7b0] ss:$8 sps:$4 sm:$0xff]  }
 0x19b   : > { %3948 = vmatprep.subr.msk.bf16.mxu1 %vm2292_vm0, %v4375_v53 }
 0x19f   : > { %3101 = vmatpush1.bf16.xpose.msra.mxu0 %v4308_v45 }
 0x1a0   : > { %3932 = vmatprep.subr.msk.bf16.mxu0 %vm2292_vm0, %v4312_v63  ;;  %v4368_v63 = vld [vmem:[%s6064_s1 + $0x6d0] ss:$8 sps:$4 sm:$0xff]  }
 0x1a2   : > { %3144 = vmatpush1.bf16.xpose.msra.mxu1 %v4377_v55 }
 0x1a3   : > { %3949 = vmatprep.subr.msk.bf16.mxu1 %vm2292_vm0, %v4381_v57  ;;  %v4431_v57 = vld [vmem:[%s6064_s1 + $0x7c0] ss:$8 sps:$4 sm:$0xff]  }
 0x1a7   : > { %3103 = vmatpush1.bf16.xpose.msra.mxu0 %v4314_v50 }
 0x1a8   : > { %3933 = vmatprep.subr.msk.bf16.mxu0 %vm2292_vm0, %v4318_v52 }
 0x1aa   : > { %3146 = vmatpush1.bf16.xpose.msra.mxu1 %v4383_v59  ;;  %v4435_v59 = vld [vmem:[%s6064_s1 + $0x7d4] ss:$8 sps:$4 sm:$0xff]  }
 0x1ab   : > { %3950 = vmatprep.subr.msk.bf16.mxu1 %vm2292_vm0, %v4387_v61  ;;  %v4437_v61 = vld [vmem:[%s6064_s1 + $0x7d0] ss:$8 sps:$4 sm:$0xff]  }
 0x1af   : > { %3105 = vmatpush1.bf16.xpose.msra.mxu0 %v4320_v54  ;;  %v4429_v54 = vld [vmem:[%s6064_s1 + $0x7c4] ss:$8 sps:$4 sm:$0xff]  }
 0x1b0   : > { %3934 = vmatprep.subr.msk.bf16.mxu0 %vm2292_vm0, %v4324_v56  ;;  %v4374_v56 = vld [vmem:[%s6064_s1 + $0x6e0] ss:$8 sps:$4 sm:$0xff]  }
 0x1b2   : > { %3148 = vmatpush1.bf16.xpose.msra.mxu1 %v4389_v0  ;;  %v4441_v0 = vld [vmem:[%s6064_s1 + $0x7e4] ss:$8 sps:$4 sm:$0xff]  }
 0x1b3   : > { %3951 = vmatprep.subr.msk.bf16.mxu1 %vm2292_vm0, %v4393_v3  ;;  %v4443_v3 = vld [vmem:[%s6064_s1 + $0x7e0] ss:$8 sps:$4 sm:$0xff]  }
 0x1b7   : > { %3107 = vmatpush1.bf16.xpose.msra.mxu0 %v4326_v58  ;;  %v4378_v58 = vld [vmem:[%s6064_s1 + $0x6f4] ss:$8 sps:$4 sm:$0xff]  }
 0x1b8   : > { %3935 = vmatprep.subr.msk.bf16.mxu0 %vm2292_vm0, %v4330_v60  ;;  %v4380_v60 = vld [vmem:[%s6064_s1 + $0x6f0] ss:$8 sps:$4 sm:$0xff]  }
 0x1ba   : > { %3150 = vmatpush1.bf16.xpose.msra.mxu1 %v4395_v7  ;;  %v4447_v7 = vld [vmem:[%s6064_s1 + $0x7f4] ss:$8 sps:$4 sm:$0xff]  }
 0x1bb   : > { %3952 = vmatprep.subr.msk.bf16.mxu1 %vm2292_vm0, %v4399_v9  ;;  %v4392_v9 = vld [vmem:[%s6064_s1 + $0x810] ss:$8 sps:$4 sm:$0xff]  }
 0x1bf   : > { %3109 = vmatpush1.bf16.xpose.msra.mxu0 %v4332_v62  ;;  %v4384_v62 = vld [vmem:[%s6064_s1 + $0x804] ss:$8 sps:$4 sm:$0xff]  }
 0x1c0   : > { %3936 = vmatprep.subr.msk.bf16.mxu0 %vm2292_vm0, %v4336_v1  ;;  %v4386_v1 = vld [vmem:[%s6064_s1 + $0x800] ss:$8 sps:$4 sm:$0xff]  }
 0x1c2   : > { %3152 = vmatpush1.bf16.xpose.msra.mxu1 %v4401_v11  ;;  %v4396_v11 = vld [vmem:[%s6064_s1 + $0x824] ss:$8 sps:$4 sm:$0xff]  }
 0x1c3   : > { %3953 = vmatprep.subr.msk.bf16.mxu1 %vm2292_vm0, %v4405_v13  ;;  %v4398_v13 = vld [vmem:[%s6064_s1 + $0x820] ss:$8 sps:$4 sm:$0xff]  }
 0x1c7   : > { %3111 = vmatpush1.bf16.xpose.msra.mxu0 %v4338_v4  ;;  %v4390_v4 = vld [vmem:[%s6064_s1 + $0x814] ss:$8 sps:$4 sm:$0xff]  }
 0x1c8   : > { %3937 = vmatprep.subr.msk.bf16.mxu0 %vm2292_vm0, %v4342_v8  ;;  %v5622_v8 = vld [vmem:[%s4666_s20] ss:$8 sps:$4 sm:$0xff]  }
 0x1ca   : > { %3154 = vmatpush1.bf16.xpose.msra.mxu1 %v4407_v14  ;;  %v4402_v14 = vld [vmem:[%s6064_s1 + $0x834] ss:$8 sps:$4 sm:$0xff]  }
 0x1cb   : > { %3954 = vmatprep.subr.msk.bf16.mxu1 %vm2292_vm0, %v4411_v19  ;;  %v4404_v19 = vld [vmem:[%s6064_s1 + $0x830] ss:$8 sps:$4 sm:$0xff]  }
 0x1cf   : > { %3113 = vmatpush1.bf16.xpose.msra.mxu0 %v4344_v10  ;;  %v4449_v10 = vld [vmem:[%s6064_s1 + $0x7f0] ss:$8 sps:$4 sm:$0xff]  }
 0x1d0   : > { %3938 = vmatprep.subr.msk.bf16.mxu0 %vm2292_vm0, %v4348_v12  ;;  %v4453_v12 = vld [vmem:[%s6064_s1 + $0x904] ss:$8 sps:$4 sm:$0xff]  }
 0x1d2   : > { %3156 = vmatpush1.bf16.xpose.msra.mxu1 %v4413_v28  ;;  %v4473_v28 = vld [vmem:[%s6064_s1 + $0x930] ss:$8 sps:$4 sm:$0xff]  }
 0x1d3   : > { %3955 = vmatprep.subr.msk.bf16.mxu1 %vm2292_vm0, %v4417_v32  ;;  %v4479_v32 = vld [vmem:[%s6064_s1 + $0x940] ss:$8 sps:$4 sm:$0xff]  }
 0x1d7   : > { %3115 = vmatpush1.bf16.xpose.msra.mxu0 %v4350_v16  ;;  %v4455_v16 = vld [vmem:[%s6064_s1 + $0x900] ss:$8 sps:$4 sm:$0xff]  }
 0x1d8   : > { %3939 = vmatprep.subr.msk.bf16.mxu0 %vm2292_vm0, %v4354_v18  ;;  %v4459_v18 = vld [vmem:[%s6064_s1 + $0x914] ss:$8 sps:$4 sm:$0xff]  }
 0x1d9   : > { %v2956_v22 = vpop.f32.mrb[4].mxu0 }
 0x1da   : > { %v2957_v23 = vadd.f32 %v2956_v22, %v567_v20  ;;  %v2958_v24 = vpop.f32.mrb[5].mxu0  ;;  %3158 = vmatpush1.bf16.xpose.msra.mxu1 %v4419_v36  ;;  %v4465_v22 = vld [vmem:[%s6064_s1 + $0x924] ss:$8 sps:$4 sm:$0xff]   ;;  %v4428_v36 = vld [vmem:[%s6064_s1 + $0x870] ss:$8 sps:$4 sm:$0xff]  }
 0x1db   : > { %v2959_v25 = vadd.f32 %v2958_v24, %v571_v21  ;;  %v2960_v26 = vpop.f32.mrb[6].mxu0  ;;  %3956 = vmatprep.subr.msk.bf16.mxu1 %vm2292_vm0, %v4423_v39  ;;  %v4467_v24 = vld [vmem:[%s6064_s1 + $0x920] ss:$8 sps:$4 sm:$0xff]   ;;  %v4432_v39 = vld [vmem:[%s6064_s1 + $0x884] ss:$8 sps:$4 sm:$0xff]  }
 0x1dc   : > { %3354 = vst [vmem:[%s5262_s27 + $0x20] sm:$0xff] %v2957_v23  ;;  %v2961_v29 = vadd.f32 %v2960_v26, %v567_v20  ;;  %v2962_v30 = vpop.f32.mrb[7].mxu0  ;;  %v2999_v42 = vpop.f32.mrb[4].mxu1  ;;  %v4461_v20 = vld [vmem:[%s6064_s1 + $0x910] ss:$8 sps:$4 sm:$0xff]  }
 0x1dd   : > { %3355 = vst [vmem:[%s5262_s27 + $0x28] sm:$0xff] %v2959_v25  ;;  %v2963_v33 = vadd.f32 %v2962_v30, %v571_v21  ;;  %v3000_v45 = vadd.f32 %v2999_v42, %v575_v40  ;;  %v3001_v48 = vpop.f32.mrb[5].mxu1  ;;  %v4408_v21 = vld [vmem:[%s6064_s1 + $0x844] ss:$8 sps:$4 sm:$0xff]   ;;  %v4410_v23 = vld [vmem:[%s6064_s1 + $0x840] ss:$8 sps:$4 sm:$0xff]  }
 0x1de   : > { %3377 = vst [vmem:[%s5262_s27 + $0xd8] sm:$0xff] %v2961_v29  ;;  %v3002_v49 = vadd.f32 %v3001_v48, %v579_v41  ;;  %v3003_v50 = vpop.f32.mrb[6].mxu1  ;;  %v4414_v25 = vld [vmem:[%s6064_s1 + $0x854] ss:$8 sps:$4 sm:$0xff]   ;;  %v4420_v29 = vld [vmem:[%s6064_s1 + $0x864] ss:$8 sps:$4 sm:$0xff]  }
 0x1df   : > { %3378 = vst [vmem:[%s5262_s27 + $0xe0] sm:$0xff] %v2963_v33  ;;  %3117 = vmatpush1.bf16.xpose.msra.mxu0 %v4356_v27  ;;  %3356 = vst [vmem:[%s5262_s27 + $0x30] sm:$0xff] %v3000_v45  ;;  %v3004_v52 = vadd.f32 %v3003_v50, %v575_v40  ;;  %v3005_v53 = vpop.f32.mrb[7].mxu1  ;;  %v4471_v26 = vld [vmem:[%s6064_s1 + $0x934] ss:$8 sps:$4 sm:$0xff]  }
 0x1e0   : > { %3940 = vmatprep.subr.msk.bf16.mxu0 %vm2292_vm0, %v4360_v31  ;;  %3357 = vst [vmem:[%s5262_s27 + $0x38] sm:$0xff] %v3002_v49  ;;  %v3006_v55 = vadd.f32 %v3005_v53, %v579_v41  ;;  %v4416_v27 = vld [vmem:[%s6064_s1 + $0x850] ss:$8 sps:$4 sm:$0xff]   ;;  %v4477_v30 = vld [vmem:[%s6064_s1 + $0x944] ss:$8 sps:$4 sm:$0xff]  }
 0x1e1   : > { %3379 = vst [vmem:[%s5262_s27 + $0xe8] sm:$0xff] %v3004_v52  ;;  %v4422_v31 = vld [vmem:[%s6064_s1 + $0x860] ss:$8 sps:$4 sm:$0xff]   ;;  %v4426_v33 = vld [vmem:[%s6064_s1 + $0x874] ss:$8 sps:$4 sm:$0xff]  }
 0x1e2   : > { %3380 = vst [vmem:[%s5262_s27 + $0xf0] sm:$0xff] %v3006_v55  ;;  %3160 = vmatpush1.bf16.xpose.msra.mxu1 %v4425_v51  ;;  %v4489_v40 = vld [vmem:[%s6064_s1 + $0x964] ss:$8 sps:$4 sm:$0xff]   ;;  %v4434_v41 = vld [vmem:[%s6064_s1 + $0x880] ss:$8 sps:$4 sm:$0xff]  }
 0x1e3   : > { %3957 = vmatprep.subr.msk.bf16.mxu1 %vm2292_vm0, %v4429_v54  ;;  %v4491_v42 = vld [vmem:[%s6064_s1 + $0x960] ss:$8 sps:$4 sm:$0xff]   ;;  %v4438_v45 = vld [vmem:[%s6064_s1 + $0x894] ss:$8 sps:$4 sm:$0xff]   ;;  %v4497_v49 = vld [vmem:[%s6064_s1 + $0x970] ss:$8 sps:$4 sm:$0xff]  }
 0x1e4   : > { %v4495_v48 = vld [vmem:[%s6064_s1 + $0x974] ss:$8 sps:$4 sm:$0xff]   ;;  %v4444_v50 = vld [vmem:[%s6064_s1 + $0x8a4] ss:$8 sps:$4 sm:$0xff]   ;;  %v4503_v53 = vld [vmem:[%s6064_s1 + $0x980] ss:$8 sps:$4 sm:$0xff]  }
 0x1e5   : > { %v4501_v51 = vld [vmem:[%s6064_s1 + $0x984] ss:$8 sps:$4 sm:$0xff]   ;;  %v4450_v54 = vld [vmem:[%s6064_s1 + $0x8b4] ss:$8 sps:$4 sm:$0xff]  }
 0x1e6   : > { %v5764_v52 = vld [vmem:[%s6065_s2 + $0x8] sm:$0xff]  ;;  %v4507_v55 = vld [vmem:[%s6064_s1 + $0x994] ss:$8 sps:$4 sm:$0xff]  }
 0x1e7   : > { %3119 = vmatpush1.bf16.xpose.msra.mxu0 %v4362_v35  ;;  %v4483_v35 = vld [vmem:[%s6064_s1 + $0x954] ss:$8 sps:$4 sm:$0xff]  }
 0x1e8   : > { %3941 = vmatprep.subr.msk.bf16.mxu0 %vm2292_vm0, %v4366_v38  ;;  %v4485_v38 = vld [vmem:[%s6064_s1 + $0x950] ss:$8 sps:$4 sm:$0xff]  }
 0x1ea   : > { %3162 = vmatpush1.bf16.xpose.msra.mxu1 %v4431_v57  ;;  %v587_v57 = vrot.slane %v5764_v52, %v5241_v47 }
 0x1eb   : > { %3958 = vmatprep.subr.msk.bf16.mxu1 %vm2292_vm0, %v4435_v59 }
 0x1ef   : > { %3121 = vmatpush1.bf16.xpose.msra.mxu0 %v4368_v63  ;;  %v4440_v63 = vld [vmem:[%s6064_s1 + $0x890] ss:$8 sps:$4 sm:$0xff]  }
 0x1f0   : > { %3942 = vmatprep.subr.msk.bf16.mxu0 %vm2292_vm0, %v4372_v46  ;;  %v4446_v46 = vld [vmem:[%s6064_s1 + $0x8a0] ss:$8 sps:$4 sm:$0xff]  }
 0x1f2   : > { %3164 = vmatpush1.bf16.xpose.msra.mxu1 %v4437_v61 }
 0x1f3   : > { %3959 = vmatprep.subr.msk.bf16.mxu1 %vm2292_vm0, %v4441_v0  ;;  %v4452_v0 = vld [vmem:[%s6064_s1 + $0x8b0] ss:$8 sps:$4 sm:$0xff]  }
 0x1f7   : > { %3123 = vmatpush1.bf16.xpose.msra.mxu0 %v4374_v56  ;;  %v583_v56 = vrot.slane %v5764_v52, %v5230_v44 }
 0x1f8   : > { %3943 = vmatprep.subr.msk.bf16.mxu0 %vm2292_vm0, %v4378_v58 }
 0x1fa   : > { %3166 = vmatpush1.bf16.xpose.msra.mxu1 %v4443_v3 }
 0x1fb   : > { %3960 = vmatprep.subr.msk.bf16.mxu1 %vm2292_vm0, %v4447_v7  ;;  %v4456_v7 = vld [vmem:[%s6064_s1 + $0x8c4] ss:$8 sps:$4 sm:$0xff]  }
 0x1ff   : > { %3125 = vmatpush1.bf16.xpose.msra.mxu0 %v4380_v60 }
 0x200   : > { %3962 = vmatprep.subr.msk.bf16.mxu0 %vm2292_vm0, %v4384_v62 }
 0x202   : > { %3168 = vmatpush1.bf16.xpose.msra.mxu1 %v4449_v10 }
 0x203   : > { %3979 = vmatprep.subr.msk.bf16.mxu1 %vm2292_vm0, %v4453_v12  ;;  %v4515_v12 = vld [vmem:[%s6064_s1 + $0x9a0] ss:$8 sps:$4 sm:$0xff]  }
 0x206   : > { %3127 = vmatmul.mubr.bf16.vlgmr.msra.gmra.mrb[12].mxu0 %v5622_v8 }
 0x207   : > { %3181 = vmatpush1.bf16.xpose.msra.mxu0 %v4386_v1  ;;  %3978 = vmatprep.mubr.msk.bf16.mxu0 %vm2292_vm0, %v5094_v5  ;;  %v4509_v1 = vld [vmem:[%s6064_s1 + $0x990] ss:$8 sps:$4 sm:$0xff]  }
 0x208   : > { %3963 = vmatprep.subr.msk.bf16.mxu0 %vm2292_vm0, %v4390_v4 }
 0x209   : > { %3170 = vmatmul.mubr.bf16.vlgmr.msra.gmra.mrb[12].mxu1 %v5622_v8 }
 0x20a   : > { %3224 = vmatpush1.bf16.xpose.msra.mxu1 %v4455_v16  ;;  %3995 = vmatprep.mubr.msk.bf16.mxu1 %vm2292_vm0, %v5094_v5  ;;  %v4519_v16 = vld [vmem:[%s6064_s1 + $0x9b4] ss:$8 sps:$4 sm:$0xff]  }
 0x20b   : > { %3980 = vmatprep.subr.msk.bf16.mxu1 %vm2292_vm0, %v4459_v18  ;;  %v595_v18 = vrot.slane %v5764_v52, %v5292_v6 }
 0x20f   : > { %3183 = vmatpush1.bf16.xpose.msra.mxu0 %v4392_v9  ;;  %v4513_v9 = vld [vmem:[%s6064_s1 + $0x9a4] ss:$8 sps:$4 sm:$0xff]  }
 0x210   : > { %3964 = vmatprep.subr.msk.bf16.mxu0 %vm2292_vm0, %v4396_v11  ;;  %v4458_v11 = vld [vmem:[%s6064_s1 + $0x8c0] ss:$8 sps:$4 sm:$0xff]  }
 0x212   : > { %3226 = vmatpush1.bf16.xpose.msra.mxu1 %v4461_v20 }
 0x213   : > { %3981 = vmatprep.subr.msk.bf16.mxu1 %vm2292_vm0, %v4465_v22  ;;  %v4464_v22 = vld [vmem:[%s6064_s1 + $0x8d0] ss:$8 sps:$4 sm:$0xff]  }
 0x217   : > { %3185 = vmatpush1.bf16.xpose.msra.mxu0 %v4398_v13  ;;  %v4462_v13 = vld [vmem:[%s6064_s1 + $0x8d4] ss:$8 sps:$4 sm:$0xff]  }
 0x218   : > { %3965 = vmatprep.subr.msk.bf16.mxu0 %vm2292_vm0, %v4402_v14  ;;  %v591_v14 = vrot.slane %v5764_v52, %v5283_v2 }
 0x21a   : > { %3228 = vmatpush1.bf16.xpose.msra.mxu1 %v4467_v24 }
 0x21b   : > { %3982 = vmatprep.subr.msk.bf16.mxu1 %vm2292_vm0, %v4471_v26  ;;  %v4468_v26 = vld [vmem:[%s6064_s1 + $0x8e4] ss:$8 sps:$4 sm:$0xff]  }
 0x21f   : > { %3187 = vmatpush1.bf16.xpose.msra.mxu0 %v4404_v19 }
 0x220   : > { %3966 = vmatprep.subr.msk.bf16.mxu0 %vm2292_vm0, %v4408_v21 }
 0x222   : > { %3230 = vmatpush1.bf16.xpose.msra.mxu1 %v4473_v28 }
 0x223   : > { %3983 = vmatprep.subr.msk.bf16.mxu1 %vm2292_vm0, %v4477_v30 }
 0x227   : > { %3189 = vmatpush1.bf16.xpose.msra.mxu0 %v4410_v23 }
 0x228   : > { %3967 = vmatprep.subr.msk.bf16.mxu0 %vm2292_vm0, %v4414_v25  ;;  %v4521_v25 = vld [vmem:[%s6064_s1 + $0x9b0] ss:$8 sps:$4 sm:$0xff]  }
 0x22a   : > { %3232 = vmatpush1.bf16.xpose.msra.mxu1 %v4479_v32  ;;  %v4527_v32 = vld [vmem:[%s6064_s1 + $0x9c0] ss:$8 sps:$4 sm:$0xff]  }
 0x22b   : > { %3984 = vmatprep.subr.msk.bf16.mxu1 %vm2292_vm0, %v4483_v35  ;;  %v4531_v35 = vld [vmem:[%s6064_s1 + $0x9d4] ss:$8 sps:$4 sm:$0xff]  }
 0x22f   : > { %3191 = vmatpush1.bf16.xpose.msra.mxu0 %v4416_v27 }
 0x230   : > { %3968 = vmatprep.subr.msk.bf16.mxu0 %vm2292_vm0, %v4420_v29  ;;  %v4525_v29 = vld [vmem:[%s6064_s1 + $0x9c4] ss:$8 sps:$4 sm:$0xff]  }
 0x232   : > { %3234 = vmatpush1.bf16.xpose.msra.mxu1 %v4485_v38  ;;  %v4533_v38 = vld [vmem:[%s6064_s1 + $0x9d0] ss:$8 sps:$4 sm:$0xff]  }
 0x233   : > { %3985 = vmatprep.subr.msk.bf16.mxu1 %vm2292_vm0, %v4489_v40  ;;  %v4537_v40 = vld [vmem:[%s6064_s1 + $0x9e4] ss:$8 sps:$4 sm:$0xff]  }
 0x237   : > { %3193 = vmatpush1.bf16.xpose.msra.mxu0 %v4422_v31  ;;  %v4470_v31 = vld [vmem:[%s6064_s1 + $0x8e0] ss:$8 sps:$4 sm:$0xff]  }
 0x238   : > { %3969 = vmatprep.subr.msk.bf16.mxu0 %vm2292_vm0, %v4426_v33  ;;  %v4474_v33 = vld [vmem:[%s6064_s1 + $0x8f4] ss:$8 sps:$4 sm:$0xff]  }
 0x23a   : > { %3236 = vmatpush1.bf16.xpose.msra.mxu1 %v4491_v42  ;;  %v4539_v42 = vld [vmem:[%s6064_s1 + $0x9e0] ss:$8 sps:$4 sm:$0xff]  }
 0x23b   : > { %3986 = vmatprep.subr.msk.bf16.mxu1 %vm2292_vm0, %v4495_v48  ;;  %v4543_v48 = vld [vmem:[%s6064_s1 + $0x9f4] ss:$8 sps:$4 sm:$0xff]  }
 0x23f   : > { %3195 = vmatpush1.bf16.xpose.msra.mxu0 %v4428_v36  ;;  %v4476_v36 = vld [vmem:[%s6064_s1 + $0x8f0] ss:$8 sps:$4 sm:$0xff]  }
 0x240   : > { %3970 = vmatprep.subr.msk.bf16.mxu0 %vm2292_vm0, %v4432_v39  ;;  %v4480_v39 = vld [vmem:[%s6064_s1 + $0xa04] ss:$8 sps:$4 sm:$0xff]  }
 0x242   : > { %3238 = vmatpush1.bf16.xpose.msra.mxu1 %v4497_v49  ;;  %v4545_v49 = vld [vmem:[%s6064_s1 + $0x9f0] ss:$8 sps:$4 sm:$0xff]  }
 0x243   : > { %3987 = vmatprep.subr.msk.bf16.mxu1 %vm2292_vm0, %v4501_v51  ;;  %v4549_v51 = vld [vmem:[%s6064_s1 + $0xb04] ss:$8 sps:$4 sm:$0xff]  }
 0x247   : > { %3197 = vmatpush1.bf16.xpose.msra.mxu0 %v4434_v41  ;;  %v4482_v41 = vld [vmem:[%s6064_s1 + $0xa00] ss:$8 sps:$4 sm:$0xff]  }
 0x248   : > { %3971 = vmatprep.subr.msk.bf16.mxu0 %vm2292_vm0, %v4438_v45  ;;  %v4486_v45 = vld [vmem:[%s6064_s1 + $0xa14] ss:$8 sps:$4 sm:$0xff]  }
 0x24a   : > { %3240 = vmatpush1.bf16.xpose.msra.mxu1 %v4503_v53  ;;  %v4498_v53 = vld [vmem:[%s6064_s1 + $0xa34] ss:$8 sps:$4 sm:$0xff]  }
 0x24b   : > { %3988 = vmatprep.subr.msk.bf16.mxu1 %vm2292_vm0, %v4507_v55  ;;  %v4575_v55 = vld [vmem:[%s4666_s20 + $0x4] ss:$8 sps:$4 sm:$0xff]  }
 0x24f   : > { %3199 = vmatpush1.bf16.xpose.msra.mxu0 %v4440_v63  ;;  %v4488_v63 = vld [vmem:[%s6064_s1 + $0xa10] ss:$8 sps:$4 sm:$0xff]  }
 0x250   : > { %3972 = vmatprep.subr.msk.bf16.mxu0 %vm2292_vm0, %v4444_v50  ;;  %v4492_v50 = vld [vmem:[%s6064_s1 + $0xa24] ss:$8 sps:$4 sm:$0xff]  }
 0x252   : > { %3242 = vmatpush1.bf16.xpose.msra.mxu1 %v4509_v1  ;;  %v4512_v1 = vld [vmem:[%s6064_s1 + $0xa50] ss:$8 sps:$4 sm:$0xff]  }
 0x253   : > { %3989 = vmatprep.subr.msk.bf16.mxu1 %vm2292_vm0, %v4513_v9  ;;  %v4522_v9 = vld [vmem:[%s6064_s1 + $0xa74] ss:$8 sps:$4 sm:$0xff]  }
 0x257   : > { %3201 = vmatpush1.bf16.xpose.msra.mxu0 %v4446_v46  ;;  %v4551_v46 = vld [vmem:[%s6064_s1 + $0xb00] ss:$8 sps:$4 sm:$0xff]  }
 0x258   : > { %3973 = vmatprep.subr.msk.bf16.mxu0 %vm2292_vm0, %v4450_v54  ;;  %v4555_v54 = vld [vmem:[%s6064_s1 + $0xb14] ss:$8 sps:$4 sm:$0xff]  }
 0x259   : > { %v3042_v58 = vpop.f32.mrb[8].mxu0 }
 0x25a   : > { %v3043_v59 = vadd.f32 %v3042_v58, %v583_v56  ;;  %v3044_v60 = vpop.f32.mrb[9].mxu0  ;;  %3244 = vmatpush1.bf16.xpose.msra.mxu1 %v4515_v12  ;;  %v4504_v58 = vld [vmem:[%s6064_s1 + $0xa44] ss:$8 sps:$4 sm:$0xff]   ;;  %v4530_v12 = vld [vmem:[%s6064_s1 + $0xa80] ss:$8 sps:$4 sm:$0xff]  }
 0x25b   : > { %v3045_v61 = vadd.f32 %v3044_v60, %v587_v57  ;;  %v3046_v62 = vpop.f32.mrb[10].mxu0  ;;  %3990 = vmatprep.subr.msk.bf16.mxu1 %vm2292_vm0, %v4519_v16  ;;  %v4506_v60 = vld [vmem:[%s6064_s1 + $0xa40] ss:$8 sps:$4 sm:$0xff]   ;;  %v4536_v16 = vld [vmem:[%s6064_s1 + $0xa90] ss:$8 sps:$4 sm:$0xff]  }
 0x25c   : > { %3358 = vst [vmem:[%s5262_s27 + $0x40] sm:$0xff] %v3043_v59  ;;  %v3047_v3 = vadd.f32 %v3046_v62, %v583_v56  ;;  %v3048_v4 = vpop.f32.mrb[11].mxu0  ;;  %v3085_v19 = vpop.f32.mrb[8].mxu1  ;;  %v4500_v56 = vld [vmem:[%s6064_s1 + $0xa30] ss:$8 sps:$4 sm:$0xff]  }
 0x25d   : > { %3359 = vst [vmem:[%s5262_s27 + $0x48] sm:$0xff] %v3045_v61  ;;  %v3049_v10 = vadd.f32 %v3048_v4, %v587_v57  ;;  %v3086_v20 = vadd.f32 %v3085_v19, %v591_v14  ;;  %v3087_v21 = vpop.f32.mrb[9].mxu1  ;;  %v4557_v57 = vld [vmem:[%s6064_s1 + $0xb10] ss:$8 sps:$4 sm:$0xff]   ;;  %v4561_v59 = vld [vmem:[%s6064_s1 + $0xb24] ss:$8 sps:$4 sm:$0xff]  }
 0x25e   : > { %3381 = vst [vmem:[%s5262_s27 + $0xf8] sm:$0xff] %v3047_v3  ;;  %v3088_v23 = vadd.f32 %v3087_v21, %v595_v18  ;;  %v3089_v24 = vpop.f32.mrb[10].mxu1  ;;  %v4563_v61 = vld [vmem:[%s6064_s1 + $0xb20] ss:$8 sps:$4 sm:$0xff]   ;;  %v4510_v62 = vld [vmem:[%s6064_s1 + $0xa54] ss:$8 sps:$4 sm:$0xff]   ;;  %v603_v21 = vrot.slane %v5764_v52, %v5505_v17 }
 0x25f   : > { %3382 = vst [vmem:[%s5262_s27 + $0x100] sm:$0xff] %v3049_v10  ;;  %3203 = vmatpush1.bf16.xpose.msra.mxu0 %v4452_v0  ;;  %3360 = vst [vmem:[%s5262_s27 + $0x50] sm:$0xff] %v3086_v20  ;;  %v3090_v27 = vadd.f32 %v3089_v24, %v591_v14  ;;  %v3091_v28 = vpop.f32.mrb[11].mxu1  ;;  %v4567_v0 = vld [vmem:[%s6064_s1 + $0xb34] ss:$8 sps:$4 sm:$0xff]   ;;  %v599_v20 = vrot.slane %v5764_v52, %v5499_v15 }
 0x260   : > { %3974 = vmatprep.subr.msk.bf16.mxu0 %vm2292_vm0, %v4456_v7  ;;  %3361 = vst [vmem:[%s5262_s27 + $0x58] sm:$0xff] %v3088_v23  ;;  %v3092_v30 = vadd.f32 %v3091_v28, %v595_v18  ;;  %v4569_v3 = vld [vmem:[%s6064_s1 + $0xb30] ss:$8 sps:$4 sm:$0xff]   ;;  %v4516_v4 = vld [vmem:[%s6064_s1 + $0xa64] ss:$8 sps:$4 sm:$0xff]  }
 0x261   : > { %3383 = vst [vmem:[%s5262_s27 + $0x108] sm:$0xff] %v3090_v27  ;;  %v4518_v7 = vld [vmem:[%s6064_s1 + $0xa60] ss:$8 sps:$4 sm:$0xff]   ;;  %v4524_v10 = vld [vmem:[%s6064_s1 + $0xa70] ss:$8 sps:$4 sm:$0xff]  }
 0x262   : > { %3384 = vst [vmem:[%s5262_s27 + $0x110] sm:$0xff] %v3092_v30  ;;  %3246 = vmatpush1.bf16.xpose.msra.mxu1 %v4521_v25  ;;  %v4540_v14 = vld [vmem:[%s6064_s1 + $0xaa4] ss:$8 sps:$4 sm:$0xff]   ;;  %v4542_v18 = vld [vmem:[%s6064_s1 + $0xaa0] ss:$8 sps:$4 sm:$0xff]  }
 0x263   : > { %3991 = vmatprep.subr.msk.bf16.mxu1 %vm2292_vm0, %v4525_v29  ;;  %v4546_v19 = vld [vmem:[%s6064_s1 + $0xab4] ss:$8 sps:$4 sm:$0xff]   ;;  %v4548_v27 = vld [vmem:[%s6064_s1 + $0xab0] ss:$8 sps:$4 sm:$0xff]   ;;  %v4552_v30 = vld [vmem:[%s6064_s1 + $0xac4] ss:$8 sps:$4 sm:$0xff]  }
 0x267   : > { %3205 = vmatpush1.bf16.xpose.msra.mxu0 %v4458_v11  ;;  %v4528_v11 = vld [vmem:[%s6064_s1 + $0xa84] ss:$8 sps:$4 sm:$0xff]  }
 0x268   : > { %3975 = vmatprep.subr.msk.bf16.mxu0 %vm2292_vm0, %v4462_v13  ;;  %v4534_v13 = vld [vmem:[%s6064_s1 + $0xa94] ss:$8 sps:$4 sm:$0xff]  }
 0x26a   : > { %3248 = vmatpush1.bf16.xpose.msra.mxu1 %v4527_v32  ;;  %v4554_v32 = vld [vmem:[%s6064_s1 + $0xac0] ss:$8 sps:$4 sm:$0xff]  }
 0x26b   : > { %3992 = vmatprep.subr.msk.bf16.mxu1 %vm2292_vm0, %v4531_v35  ;;  %v607_v35 = vrot.slane %v5764_v52, %v5541_v34 }
 0x26f   : > { %3207 = vmatpush1.bf16.xpose.msra.mxu0 %v4464_v22 }
 0x270   : > { %3976 = vmatprep.subr.msk.bf16.mxu0 %vm2292_vm0, %v4468_v26 }
 0x272   : > { %3250 = vmatpush1.bf16.xpose.msra.mxu1 %v4533_v38 }
 0x273   : > { %3993 = vmatprep.subr.msk.bf16.mxu1 %vm2292_vm0, %v4537_v40 }
 0x277   : > { %3209 = vmatpush1.bf16.xpose.msra.mxu0 %v4470_v31 }
 0x278   : > { %3977 = vmatprep.subr.msk.bf16.mxu0 %vm2292_vm0, %v4474_v33  ;;  %v4558_v33 = vld [vmem:[%s6064_s1 + $0xad4] ss:$8 sps:$4 sm:$0xff]  }
 0x27a   : > { %3252 = vmatpush1.bf16.xpose.msra.mxu1 %v4539_v42 }
 0x27b   : > { %3994 = vmatprep.subr.msk.bf16.mxu1 %vm2292_vm0, %v4543_v48  ;;  %v4564_v48 = vld [vmem:[%s6064_s1 + $0xae4] ss:$8 sps:$4 sm:$0xff]  }
 0x27f   : > { %3211 = vmatpush1.bf16.xpose.msra.mxu0 %v4476_v36  ;;  %v611_v36 = vrot.slane %v5764_v52, %v578_v37  ;;  %v4566_v52 = vld [vmem:[%s6064_s1 + $0xae0] ss:$8 sps:$4 sm:$0xff]  }
 0x280   : > { %3996 = vmatprep.subr.msk.bf16.mxu0 %vm2292_vm0, %v4480_v39 }
 0x282   : > { %3254 = vmatpush1.bf16.xpose.msra.mxu1 %v4545_v49  ;;  %v4570_v49 = vld [vmem:[%s6064_s1 + $0xaf4] ss:$8 sps:$4 sm:$0xff]  }
 0x283   : > { %4013 = vmatprep.subr.msk.bf16.mxu1 %vm2292_vm0, %v4549_v51  ;;  %v544_v51 = vld [vmem:[%s6065_s2 + $0x10] sm:$0x7f] }
 0x286   : > { %3213 = vmatmul.mubr.bf16.vlgmr.msra.gmra.mrb[16].mxu0 %v5622_v8 }
 0x287   : > { %3267 = vmatpush1.bf16.xpose.msra.mxu0 %v4482_v41  ;;  %4012 = vmatprep.mubr.msk.bf16.mxu0 %vm2292_vm0, %v5094_v5  ;;  %v4494_v5 = vld [vmem:[%s6064_s1 + $0xa20] ss:$8 sps:$4 sm:$0xff]   ;;  %v4560_v41 = vld [vmem:[%s6064_s1 + $0xad0] ss:$8 sps:$4 sm:$0xff]  }
 0x288   : > { %3997 = vmatprep.subr.msk.bf16.mxu0 %vm2292_vm0, %v4486_v45 }
 0x289   : > { %3256 = vmatmul.mubr.bf16.vlgmr.msra.gmra.mrb[16].mxu1 %v5622_v8 }
 0x28a   : > { %3310 = vmatpush1.bf16.xpose.msra.mxu1 %v4551_v46  ;;  %4017 = vmatprep.mubr.msk.bf16.mxu1 %vm2292_vm0, %v4575_v55  ;;  %v619_v46 = vrot.slane %v544_v51, %v5241_v47  ;;  %v627_v47 = vrot.slane %v544_v51, %v5292_v6 }
 0x28b   : > { %4014 = vmatprep.subr.msk.bf16.mxu1 %vm2292_vm0, %v4555_v54 }
 0x28f   : > { %3269 = vmatpush1.bf16.xpose.msra.mxu0 %v4488_v63 }
 0x290   : > { %3998 = vmatprep.subr.msk.bf16.mxu0 %vm2292_vm0, %v4492_v50  ;;  %v4572_v50 = vld [vmem:[%s6064_s1 + $0xaf0] ss:$8 sps:$4 sm:$0xff]  }
 0x292   : > { %3312 = vmatpush1.bf16.xpose.msra.mxu1 %v4557_v57 }
 0x293   : > { %4015 = vmatprep.subr.msk.bf16.mxu1 %vm2292_vm0, %v4561_v59 }
 0x297   : > { %3271 = vmatpush1.bf16.xpose.msra.mxu0 %v4494_v5  ;;  %v615_v5 = vrot.slane %v544_v51, %v5230_v44  ;;  %v623_v44 = vrot.slane %v544_v51, %v5283_v2 }
 0x298   : > { %3999 = vmatprep.subr.msk.bf16.mxu0 %vm2292_vm0, %v4498_v53 }
 0x29a   : > { %3314 = vmatpush1.bf16.xpose.msra.mxu1 %v4563_v61 }
 0x29b   : > { %4016 = vmatprep.subr.msk.bf16.mxu1 %vm2292_vm0, %v4567_v0 }
 0x29f   : > { %3273 = vmatpush1.bf16.xpose.msra.mxu0 %v4500_v56 }
 0x2a0   : > { %4000 = vmatprep.subr.msk.bf16.mxu0 %vm2292_vm0, %v4504_v58 }
 0x2a2   : > { %3316 = vmatpush1.bf16.xpose.msra.mxu1 %v4569_v3 }
 0x2a7   : > { %3275 = vmatpush1.bf16.xpose.msra.mxu0 %v4506_v60 }
 0x2a8   : > { %4001 = vmatprep.subr.msk.bf16.mxu0 %vm2292_vm0, %v4510_v62 }
 0x2a9   : > { %3342 = vmatmul.mubr.bf16.vlgmr.msra.gmra.mrb[20].mxu1 %v5622_v8 }
 0x2af   : > { %3277 = vmatpush1.bf16.xpose.msra.mxu0 %v4512_v1 }
 0x2b0   : > { %4002 = vmatprep.subr.msk.bf16.mxu0 %vm2292_vm0, %v4516_v4 }
 0x2b7   : > { %3279 = vmatpush1.bf16.xpose.msra.mxu0 %v4518_v7 }
 0x2b8   : > { %4003 = vmatprep.subr.msk.bf16.mxu0 %vm2292_vm0, %v4522_v9  ;;  %v639_v9 = vrot.slane %v544_v51, %v5541_v34 }
 0x2bf   : > { %3281 = vmatpush1.bf16.xpose.msra.mxu0 %v4524_v10 }
 0x2c0   : > { %4004 = vmatprep.subr.msk.bf16.mxu0 %vm2292_vm0, %v4528_v11 }
 0x2c7   : > { %3283 = vmatpush1.bf16.xpose.msra.mxu0 %v4530_v12 }
 0x2c8   : > { %4005 = vmatprep.subr.msk.bf16.mxu0 %vm2292_vm0, %v4534_v13 }
 0x2cf   : > { %3285 = vmatpush1.bf16.xpose.msra.mxu0 %v4536_v16  ;;  %v631_v16 = vrot.slane %v544_v51, %v5499_v15 }
 0x2d0   : > { %4006 = vmatprep.subr.msk.bf16.mxu0 %vm2292_vm0, %v4540_v14  ;;  %v635_v14 = vrot.slane %v544_v51, %v5505_v17 }
 0x2d7   : > { %3287 = vmatpush1.bf16.xpose.msra.mxu0 %v4542_v18 }
 0x2d8   : > { %4007 = vmatprep.subr.msk.bf16.mxu0 %vm2292_vm0, %v4546_v19 }
 0x2d9   : > { %v3128_v22 = vpop.f32.mrb[12].mxu0 }
 0x2da   : > { %v3129_v23 = vadd.f32 %v3128_v22, %v599_v20  ;;  %v3130_v24 = vpop.f32.mrb[13].mxu0 }
 0x2db   : > { %v3131_v25 = vadd.f32 %v3130_v24, %v603_v21  ;;  %v3132_v26 = vpop.f32.mrb[14].mxu0 }
 0x2dc   : > { %3362 = vst [vmem:[%s5262_s27 + $0x60] sm:$0xff] %v3129_v23  ;;  %v3133_v28 = vadd.f32 %v3132_v26, %v599_v20  ;;  %v3134_v29 = vpop.f32.mrb[15].mxu0  ;;  %v3171_v38 = vpop.f32.mrb[12].mxu1 }
 0x2dd   : > { %3363 = vst [vmem:[%s5262_s27 + $0x68] sm:$0xff] %v3131_v25  ;;  %v3135_v31 = vadd.f32 %v3134_v29, %v603_v21  ;;  %v3172_v39 = vadd.f32 %v3171_v38, %v607_v35  ;;  %v3173_v40 = vpop.f32.mrb[13].mxu1 }
 0x2de   : > { %3385 = vst [vmem:[%s5262_s27 + $0x118] sm:$0xff] %v3133_v28  ;;  %v3174_v42 = vadd.f32 %v3173_v40, %v611_v36  ;;  %v3175_v45 = vpop.f32.mrb[14].mxu1 }
 0x2df   : > { %3386 = vst [vmem:[%s5262_s27 + $0x120] sm:$0xff] %v3135_v31  ;;  %3289 = vmatpush1.bf16.xpose.msra.mxu0 %v4548_v27  ;;  %3364 = vst [vmem:[%s5262_s27 + $0x70] sm:$0xff] %v3172_v39  ;;  %v3176_v43 = vadd.f32 %v3175_v45, %v607_v35  ;;  %v3177_v63 = vpop.f32.mrb[15].mxu1 }
 0x2e0   : > { %4008 = vmatprep.subr.msk.bf16.mxu0 %vm2292_vm0, %v4552_v30  ;;  %3365 = vst [vmem:[%s5262_s27 + $0x78] sm:$0xff] %v3174_v42  ;;  %v3178_v37 = vadd.f32 %v3177_v63, %v611_v36 }
 0x2e1   : > { %3387 = vst [vmem:[%s5262_s27 + $0x128] sm:$0xff] %v3176_v43 }
 0x2e2   : > { %3388 = vst [vmem:[%s5262_s27 + $0x130] sm:$0xff] %v3178_v37 }
 0x2e7   : > { %3291 = vmatpush1.bf16.xpose.msra.mxu0 %v4554_v32 }
 0x2e8   : > { %4009 = vmatprep.subr.msk.bf16.mxu0 %vm2292_vm0, %v4558_v33 }
 0x2ef   : > { %3293 = vmatpush1.bf16.xpose.msra.mxu0 %v4560_v41 }
 0x2f0   : > { %4010 = vmatprep.subr.msk.bf16.mxu0 %vm2292_vm0, %v4564_v48 }
 0x2f7   : > { %3295 = vmatpush1.bf16.xpose.msra.mxu0 %v4566_v52 }
 0x2f8   : > { %4011 = vmatprep.subr.msk.bf16.mxu0 %vm2292_vm0, %v4570_v49 }
 0x2ff   : > { %3297 = vmatpush1.bf16.xpose.msra.mxu0 %v4572_v50 }
 0x306   : > { %3299 = vmatmul.mubr.bf16.vlgmr.msra.gmra.mrb[20].mxu0 %v5622_v8 }
 0x359   : > { %v3214_v53 = vpop.f32.mrb[16].mxu0 }
 0x35a   : > { %v3215_v54 = vadd.f32 %v3214_v53, %v615_v5  ;;  %v3216_v55 = vpop.f32.mrb[17].mxu0 }
 0x35b   : > { %v3217_v56 = vadd.f32 %v3216_v55, %v619_v46  ;;  %v3218_v57 = vpop.f32.mrb[18].mxu0 }
 0x35c   : > { %3366 = vst [vmem:[%s5262_s27 + $0x80] sm:$0xff] %v3215_v54  ;;  %v3219_v58 = vadd.f32 %v3218_v57, %v615_v5  ;;  %v3220_v59 = vpop.f32.mrb[19].mxu0  ;;  %v3257_v60 = vpop.f32.mrb[16].mxu1 }
 0x35d   : > { %3367 = vst [vmem:[%s5262_s27 + $0x88] sm:$0xff] %v3217_v56  ;;  %v3221_v8 = vadd.f32 %v3220_v59, %v619_v46  ;;  %v3258_v61 = vadd.f32 %v3257_v60, %v623_v44  ;;  %v3259_v62 = vpop.f32.mrb[17].mxu1 }
 0x35e   : > { %3389 = vst [vmem:[%s5262_s27 + $0x138] sm:$0xff] %v3219_v58  ;;  %v3260_v0 = vadd.f32 %v3259_v62, %v627_v47  ;;  %v3261_v1 = vpop.f32.mrb[18].mxu1 }
 0x35f   : > { %3390 = vst [vmem:[%s5262_s27 + $0x140] sm:$0xff] %v3221_v8  ;;  %3368 = vst [vmem:[%s5262_s27 + $0x90] sm:$0xff] %v3258_v61  ;;  %v3262_v3 = vadd.f32 %v3261_v1, %v623_v44  ;;  %v3263_v4 = vpop.f32.mrb[19].mxu1 }
 0x360   : > { %3369 = vst [vmem:[%s5262_s27 + $0x98] sm:$0xff] %v3260_v0  ;;  %v3264_v7 = vadd.f32 %v3263_v4, %v627_v47 }
 0x361   : > { %3391 = vst [vmem:[%s5262_s27 + $0x148] sm:$0xff] %v3262_v3 }
 0x362   : > { %3392 = vst [vmem:[%s5262_s27 + $0x150] sm:$0xff] %v3264_v7 }
 0x37c   : > { %v3343_v2 = vpop.f32.mrb[20].mxu1 }
 0x37d   : > { %v3344_v10 = vadd.f32 %v3343_v2, %v639_v9  ;;  %v3345_v6 = vpop.f32.mrb[21].mxu1 }
 0x37e   : > { %v3346_v11 = vpop.f32.mrb[22].mxu1 }
 0x37f   : > { %3372 = vst.msk [vmem:[%s5262_s27 + $0xb0] sm:$0xff] %vm2292_vm0, %v3344_v10  ;;  %v3347_v12 = vadd.f32 %v3346_v11, %v639_v9  ;;  %v3348_v13 = vpop.f32.mrb[23].mxu1 }
 0x381   : > { %3395 = vst.msk [vmem:[%s5262_s27 + $0x168] sm:$0xff] %vm2292_vm0, %v3347_v12 }
 0x3d9   : > { %v3300_v18 = vpop.f32.mrb[20].mxu0 }
 0x3da   : > { %v3301_v34 = vadd.f32 %v3300_v18, %v631_v16  ;;  %v3302_v19 = vpop.f32.mrb[21].mxu0 }
 0x3db   : > { %v3303_v20 = vadd.f32 %v3302_v19, %v635_v14  ;;  %v3304_v21 = vpop.f32.mrb[22].mxu0 }
 0x3dc   : > { %3370 = vst [vmem:[%s5262_s27 + $0xa0] sm:$0xff] %v3301_v34  ;;  %v3305_v22 = vadd.f32 %v3304_v21, %v631_v16  ;;  %v3306_v23 = vpop.f32.mrb[23].mxu0 }
 0x3dd   : > { %3371 = vst [vmem:[%s5262_s27 + $0xa8] sm:$0xff] %v3303_v20  ;;  %v3307_v24 = vadd.f32 %v3306_v23, %v635_v14 }
 0x3de   : > { %3393 = vst [vmem:[%s5262_s27 + $0x158] sm:$0xff] %v3305_v22 }
 0x3df   : > { %3394 = vst [vmem:[%s5262_s27 + $0x160] sm:$0xff] %v3307_v24 }
 0x3e0 PF: > { %s13_s12 = sadd.s32 1, %s4582_s12  }
 0x3e1   : > { %p10_p4 = scmp.ge.s32.totalorder %s13_s12, 4  }
 0x3e3   :  { %12 = sbr.rel (!%p10_p4) target bundleno = 1 (0x1), region = 62 }

</bundles_post_ra>
